<compile_context>
chip_gen: v7x
topology: tpu7x:2x2x1
jax: 0.10.0
libtpu: 0.0.40
codegen_flags: <defaults>
</compile_context>

<pallas_src>
import functools

import jax
import jax.numpy as jnp
from jax.experimental import pallas as pl
from jax.experimental.pallas import tpu as pltpu

_LANE = 128
_SUBLANE = 8

_H1 = 512                        # Linear(input_size, 512)
_H2 = 128                        # Linear(512->bridged, 128); 64 / num_classes padded to 128
_TAIL_ROWS = _H1 + 2 * _H2       # packed w2|w3|w4 rows     (768)
_BIAS_COLS = _H1 + 3 * _H2       # packed b1|b2|b3|b4 cols  (896)

_MAX_BATCH_TILE = 512
_MIN_SPLIT_TILE = 256
_VMEM_BUDGET = 40 << 20          # conservative: fits v7x 64 MiB physical VMEM with headroom


def _round_up(n, m):
    return (n + m - 1) // m * m


# --------------------------------------------------------------------------- #
# Kernels
# --------------------------------------------------------------------------- #
def _mlp_tail(h1, wt_ref, b_ref, o_ref):
    """Layers 1-bias/ReLU + layers 2-4 on the f32 layer-1 pre-bias activations.

    wt_ref is the packed (768, 128) bf16 slab [w2; w3_pad; w4_pad];
    b_ref is the packed (1, 896) f32 slab [b1 | b2 | b3_pad | b4_pad].
    All slices below are (8, 128)-tile aligned => zero-cost views.
    """
    h = jnp.maximum(h1 + b_ref[:, 0:_H1], 0.0)                                  # (tm, 512) f32
    h = jnp.dot(h.astype(jnp.bfloat16), wt_ref[0:_H1, :],
                preferred_element_type=jnp.float32) + b_ref[:, _H1:_H1 + _H2]
    h = jnp.maximum(h, 0.0)                                                     # (tm, 128) f32
    h = jnp.dot(h.astype(jnp.bfloat16), wt_ref[_H1:_H1 + _H2, :],
                preferred_element_type=jnp.float32) + b_ref[:, _H1 + _H2:_H1 + 2 * _H2]
    h = jnp.maximum(h, 0.0)                                                     # (tm, 128) f32 (cols 64.. are 0)
    out = jnp.dot(h.astype(jnp.bfloat16), wt_ref[_H1 + _H2:_TAIL_ROWS, :],
                  preferred_element_type=jnp.float32) + b_ref[:, _H1 + 2 * _H2:_BIAS_COLS]
    o_ref[...] = out.astype(o_ref.dtype)                                        # (tm, 128)


def _mlp_fused_kernel(x_ref, w1_ref, wt_ref, b_ref, o_ref):
    """Fully fused path: w1 resident in VMEM, one grid axis over batch tiles."""
    h1 = jnp.dot(x_ref[...].astype(jnp.bfloat16), w1_ref[...],
                 preferred_element_type=jnp.float32)                            # (tm, 512) f32
    _mlp_tail(h1, wt_ref, b_ref, o_ref)


def _mlp_ktiled_kernel(x_ref, w1_ref, wt_ref, b_ref, o_ref, acc_ref):
    """Large-input_size fallback: layer 1 K-tiled over the feature axis."""
    k = pl.program_id(1)

    @pl.when(k == 0)
    def _init():
        acc_ref[...] = jnp.zeros_like(acc_ref)

    acc_ref[...] += jnp.dot(x_ref[...].astype(jnp.bfloat16), w1_ref[...],
                            preferred_element_type=jnp.float32)

    @pl.when(k == pl.num_programs(1) - 1)
    def _finalize():
        _mlp_tail(acc_ref[...], wt_ref, b_ref, o_ref)


# --------------------------------------------------------------------------- #
# Planning helpers
# --------------------------------------------------------------------------- #
def _pick_batch_tile(B):
    b8 = _round_up(B, _SUBLANE)
    if b8 < 2 * _MIN_SPLIT_TILE:
        # Not enough rows for two >=256-row tiles: a single grid step
        # (v5e/v6e have one TensorCore anyway; splitting tiny batches only
        # adds per-step overhead).
        return min(b8, _MAX_BATCH_TILE)
    # >=2 grid steps so the "parallel" batch axis can shard across v7x's two
    # TensorCores, while keeping per-step M >= 256 for MXU amortization.
    return int(min(_MAX_BATCH_TILE,
                   max(_MIN_SPLIT_TILE, _round_up((B + 1) // 2, _SUBLANE))))


def _fused_vmem_bytes(tm, F):
    return (2 * tm * F * 4            # double-buffered f32 x tiles
            + F * _H1 * 2             # resident bf16 w1 (single-buffered)
            + _TAIL_ROWS * _H2 * 2    # resident packed tail weights
            + _BIAS_COLS * 4          # resident packed biases
            + 2 * tm * _LANE * 4      # double-buffered f32 output tiles
            + 3 * tm * _H1 * 4)       # in-kernel activation headroom


def _ktiled_vmem_bytes(tm, tk):
    return (2 * tm * tk * 4           # double-buffered f32 x tiles
            + 2 * tk * _H1 * 2        # double-buffered bf16 w1 K-blocks
            + _TAIL_ROWS * _H2 * 2
            + _BIAS_COLS * 4
            + 2 * tm * _LANE * 4
            + tm * _H1 * 4            # f32 layer-1 accumulator scratch
            + 3 * tm * _H1 * 4)


def _choose_plan(B, F, force_k_tile):
    tm = _pick_batch_tile(B)
    if force_k_tile is not None:
        return tm, int(force_k_tile)
    # Prefer the fully fused path (w1 resident); shrink the batch tile first.
    while tm > _MIN_SPLIT_TILE and _fused_vmem_bytes(tm, F) > _VMEM_BUDGET:
        tm = max(_MIN_SPLIT_TILE, _round_up(tm // 2, _SUBLANE))
    if _fused_vmem_bytes(tm, F) <= _VMEM_BUDGET:
        return tm, None
    # K-tiled fallback for very large input_size.
    tk = 4096
    while tk > _LANE and _ktiled_vmem_bytes(tm, tk) > _VMEM_BUDGET:
        tk //= 2
    return tm, tk


def _const_spec(shape, grid_rank):
    """BlockSpec for a parameter that stays resident in VMEM across the grid."""
    if grid_rank == 1:
        idx = lambda i: (0,) * len(shape)
    else:
        idx = lambda i, k: (0,) * len(shape)
    try:
        # Constant block index => second pipeline buffer is pure waste; keep a
        # single buffer (halves resident-weight VMEM; matters on v7x/64 MiB).
        return pl.BlockSpec(shape, idx, pipeline_mode=pl.Buffered(1))
    except TypeError:
        # Older API without pipeline_mode: fall back to default buffering.
        return pl.BlockSpec(shape, idx)


# --------------------------------------------------------------------------- #
# Forward
# --------------------------------------------------------------------------- #
@functools.partial(jax.jit, static_argnames=("num_classes", "force_k_tile"))
def model_no_conv_forward(x, params, *, num_classes, force_k_tile=None):
    """x: (B, C, H, W) float32 (NCHW).  Returns logits (B, num_classes) f32."""
    B = x.shape[0]
    x_flat = x.reshape(B, -1).astype(jnp.float32)     # nn.Flatten(); stays f32, cast to bf16 in-kernel
    F = x_flat.shape[1]

    (w1, b1), (w2, b2), (w3, b3), (w4, b4) = params

    # Pack the small tail parameters into two resident operands (fewer prologue
    # DMA descriptors; the B=2 case is DMA-latency bound).
    w3p = jnp.pad(w3, ((0, 0), (0, _H2 - w3.shape[1])))                 # (128, 128)
    w4p = jnp.pad(w4, ((0, _H2 - w4.shape[0]), (0, _LANE - w4.shape[1])))  # (128, 128)
    wt = jnp.concatenate([w2, w3p, w4p], axis=0).astype(jnp.bfloat16)   # (768, 128) bf16
    bias = jnp.concatenate(
        [b1, b2,
         jnp.pad(b3, ((0, 0), (0, _H2 - b3.shape[1]))),
         jnp.pad(b4, ((0, 0), (0, _LANE - b4.shape[1])))],
        axis=1).astype(jnp.float32)                                      # (1, 896) f32
    w1b = w1.astype(jnp.bfloat16)                                        # (F, 512) bf16

    tm, tk = _choose_plan(B, F, force_k_tile)
    gm = pl.cdiv(B, tm)
    Bp = gm * tm          # out_shape padded to a tile multiple; rows >= B sliced off below

    if tk is None:
        grid = (gm,)
        in_specs = [
            pl.BlockSpec((tm, F), lambda i: (i, 0)),       # pipelined x tiles (ragged last tile ok)
            _const_spec((F, _H1), 1),                      # resident w1
            _const_spec((_TAIL_ROWS, _H2), 1),             # resident packed tail weights
            _const_spec((1, _BIAS_COLS), 1),               # resident packed biases
        ]
        out_specs = pl.BlockSpec((tm, _LANE), lambda i: (i, 0))
        scratch_shapes = []
        dim_sem = ("parallel",)
        kernel = _mlp_fused_kernel
        footprint = _fused_vmem_bytes(tm, F)
        x_in, w1_in = x_flat, w1b
    else:
        # K-tiled layer 1: pad F to a multiple of tk so the reduction is exact.
        tk = max(_LANE, _round_up(min(tk, _round_up(F, _LANE)), _LANE))
        Fp = _round_up(F, tk)
        x_in = jnp.pad(x_flat, ((0, 0), (0, Fp - F))) if Fp != F else x_flat
        w1_in = jnp.pad(w1b, ((0, Fp - F), (0, 0))) if Fp != F else w1b
        grid = (gm, Fp // tk)
        in_specs = [
            pl.BlockSpec((tm, tk), lambda i, k: (i, k)),
            pl.BlockSpec((tk, _H1), lambda i, k: (k, 0)),
            _const_spec((_TAIL_ROWS, _H2), 2),
            _const_spec((1, _BIAS_COLS), 2),
        ]
        out_specs = pl.BlockSpec((tm, _LANE), lambda i, k: (i, 0))
        scratch_shapes = [pltpu.VMEM((tm, _H1), jnp.float32)]
        dim_sem = ("parallel", "arbitrary")
        kernel = _mlp_ktiled_kernel
        footprint = _ktiled_vmem_bytes(tm, tk)

    flops = 2 * Bp * (F * _H1 + _H1 * _H2 + 2 * _H2 * _H2)
    bytes_accessed = (x_in.size * 4 + w1_in.size * 2 + wt.size * 2
                      + bias.size * 4 + Bp * _LANE * 4)
    # Explicit scoped-VMEM limit computed from the footprint (v5e's default is
    # only 16 MiB); clamped to v7x's 64 MiB physical VMEM.
    vmem_limit = max(32 << 20, min(int(footprint * 1.5) + (2 << 20), 64 << 20))

    out = pl.pallas_call(
        kernel,
        out_shape=jax.ShapeDtypeStruct((Bp, _LANE), jnp.float32),
        grid=grid,
        in_specs=in_specs,
        out_specs=out_specs,
        scratch_shapes=scratch_shapes,
        compiler_params=pltpu.CompilerParams(
            dimension_semantics=dim_sem,
            vmem_limit_bytes=vmem_limit,
        ),
        cost_estimate=pl.CostEstimate(
            flops=flops, transcendentals=0, bytes_accessed=bytes_accessed),
    )(x_in, w1_in, wt, bias)

    return out[:B, :num_classes]


# --------------------------------------------------------------------------- #
# Params / reference
# --------------------------------------------------------------------------- #
def init_params(key, input_size, num_classes):
    """Deterministic init mimicking PyTorch Linear default (U[-1/sqrt(fan_in), +])."""
    # (in, out) layer sizes; second layer bridged 256 -> 512 (see TODO above).
    dims = [(input_size, 512), (512, 128), (128, 64), (64, num_classes)]
    params = []
    for (fan_in, fan_out) in dims:
        key, kw, kb = jax.random.split(key, 3)
        bound = 1.0 / jnp.sqrt(jnp.float32(fan_in))
        w = jax.random.uniform(kw, (fan_in, fan_out), jnp.float32, -bound, bound)
        b = jax.random.uniform(kb, (1, fan_out), jnp.float32, -bound, bound)
        params.append((w, b))
    return params


def reference_forward(x, params):
    """Plain-JAX f32 reference for correctness check."""
    h = x.reshape(x.shape[0], -1)
    for i, (w, b) in enumerate(params):
        h = h @ w + b
        if i < len(params) - 1:
            h = jnp.maximum(h, 0.0)
    return h


if __name__ == "__main__":
    # Small shapes consistent with the module: batch=2, channels=4, spatial=16.
    B, C, H, W = 2, 4, 16, 16
    input_size = C * H * W            # 1024
    num_classes = 10

    key = jax.random.PRNGKey(0)
    key, kx = jax.random.split(key)
    x = jax.random.normal(kx, (B, C, H, W), jnp.float32)
    params = init_params(key, input_size, num_classes)

    ref = reference_forward(x, params)

    # Fused (resident-w1) path.
    out = model_no_conv_forward(x, params, num_classes=num_classes)
    out = jax.block_until_ready(out)
    assert out.shape == (B, num_classes)
    # Tolerance loosened vs pure f32 because matmul operands are bf16
    # (f32 accumulation keeps the error at the ~1e-2 relative level).
    assert jnp.allclose(out, ref, atol=2e-2, rtol=2e-2), "fused path mismatch vs reference"

    # Also exercise the K-tiled (large-input_size) fallback path at small shape.
    out_kt = model_no_conv_forward(x, params, num_classes=num_classes, force_k_tile=256)
    out_kt = jax.block_until_ready(out_kt)
    assert out_kt.shape == (B, num_classes)
    assert jnp.allclose(out_kt, ref, atol=2e-2, rtol=2e-2), "K-tiled path mismatch vs reference"

    print("KERNEL_OK")
</pallas_src>

<mosaic_0001>
module attributes {stable_mosaic.version = 11 : i64} {
  func.func @_mlp_fused_kernel(%arg0: i32, %arg1: memref<8x1024xf32, #tpu.memory_space<vmem>>, %arg2: memref<1024x512xbf16, #tpu.memory_space<vmem>>, %arg3: memref<768x128xbf16, #tpu.memory_space<vmem>>, %arg4: memref<1x896xf32, #tpu.memory_space<vmem>>, %arg5: memref<8x128xf32, #tpu.memory_space<vmem>>) attributes {dimension_semantics = [#tpu.dimension_semantics<parallel>], iteration_bounds = array<i64: 1>, scalar_prefetch = 0 : i64, scratch_operands = 0 : i64, tpu.core_type = #tpu.core_type<tc>, window_params = [{transform_indices = @transform_0, window_bounds = array<i64: 8, 1024>}, {pipeline_mode = #tpu.pipeline_mode<synchronous>, transform_indices = @transform_1, window_bounds = array<i64: 1024, 512>}, {pipeline_mode = #tpu.pipeline_mode<synchronous>, transform_indices = @transform_2, window_bounds = array<i64: 768, 128>}, {pipeline_mode = #tpu.pipeline_mode<synchronous>, transform_indices = @transform_3, window_bounds = array<i64: 1, 896>}, {transform_indices = @transform_4, window_bounds = array<i64: 8, 128>}]} {
    %c0 = arith.constant 0 : index
    %c0_0 = arith.constant 0 : index
    %0 = vector.load %arg1[%c0, %c0_0] : memref<8x1024xf32, #tpu.memory_space<vmem>>, vector<8x1024xf32>
    %1 = arith.truncf %0 : vector<8x1024xf32> to vector<8x1024xbf16>
    %c0_1 = arith.constant 0 : index
    %c0_2 = arith.constant 0 : index
    %2 = vector.load %arg2[%c0_1, %c0_2] : memref<1024x512xbf16, #tpu.memory_space<vmem>>, vector<1024x512xbf16>
    %cst = arith.constant dense<0.000000e+00> : vector<8x512xf32>
    %3 = tpu.matmul %1, %2, %cst {dimension_numbers = #tpu.dot_dimension_numbers<[1], [0], [0], [1], [0, 0, 1, 1], [], []>} : vector<8x1024xbf16>, vector<1024x512xbf16>, vector<8x512xf32> -> vector<8x512xf32>
    %c0_3 = arith.constant 0 : index
    %c0_4 = arith.constant 0 : index
    %4 = vector.load %arg4[%c0_3, %c0_4] : memref<1x896xf32, #tpu.memory_space<vmem>>, vector<1x512xf32>
    %5 = vector.broadcast %4 : vector<1x512xf32> to vector<8x512xf32>
    %6 = arith.addf %3, %5 : vector<8x512xf32>
    %cst_5 = arith.constant 0.000000e+00 : f32
    %7 = vector.broadcast %cst_5 : f32 to vector<8x512xf32>
    %8 = arith.maximumf %6, %7 : vector<8x512xf32>
    %9 = arith.truncf %8 : vector<8x512xf32> to vector<8x512xbf16>
    %c0_6 = arith.constant 0 : index
    %c0_7 = arith.constant 0 : index
    %10 = vector.load %arg3[%c0_6, %c0_7] : memref<768x128xbf16, #tpu.memory_space<vmem>>, vector<512x128xbf16>
    %cst_8 = arith.constant dense<0.000000e+00> : vector<8x128xf32>
    %11 = tpu.matmul %9, %10, %cst_8 {dimension_numbers = #tpu.dot_dimension_numbers<[1], [0], [0], [1], [0, 0, 1, 1], [], []>} : vector<8x512xbf16>, vector<512x128xbf16>, vector<8x128xf32> -> vector<8x128xf32>
    %c0_9 = arith.constant 0 : index
    %c512 = arith.constant 512 : index
    %12 = vector.load %arg4[%c0_9, %c512] : memref<1x896xf32, #tpu.memory_space<vmem>>, vector<1x128xf32>
    %13 = vector.broadcast %12 : vector<1x128xf32> to vector<8x128xf32>
    %14 = arith.addf %11, %13 : vector<8x128xf32>
    %cst_10 = arith.constant 0.000000e+00 : f32
    %15 = vector.broadcast %cst_10 : f32 to vector<8x128xf32>
    %16 = arith.maximumf %14, %15 : vector<8x128xf32>
    %17 = arith.truncf %16 : vector<8x128xf32> to vector<8x128xbf16>
    %c512_11 = arith.constant 512 : index
    %c0_12 = arith.constant 0 : index
    %18 = vector.load %arg3[%c512_11, %c0_12] : memref<768x128xbf16, #tpu.memory_space<vmem>>, vector<128x128xbf16>
    %cst_13 = arith.constant dense<0.000000e+00> : vector<8x128xf32>
    %19 = tpu.matmul %17, %18, %cst_13 {dimension_numbers = #tpu.dot_dimension_numbers<[1], [0], [0], [1], [0, 0, 1, 1], [], []>} : vector<8x128xbf16>, vector<128x128xbf16>, vector<8x128xf32> -> vector<8x128xf32>
    %c0_14 = arith.constant 0 : index
    %c640 = arith.constant 640 : index
    %20 = vector.load %arg4[%c0_14, %c640] : memref<1x896xf32, #tpu.memory_space<vmem>>, vector<1x128xf32>
    %21 = vector.broadcast %20 : vector<1x128xf32> to vector<8x128xf32>
    %22 = arith.addf %19, %21 : vector<8x128xf32>
    %cst_15 = arith.constant 0.000000e+00 : f32
    %23 = vector.broadcast %cst_15 : f32 to vector<8x128xf32>
    %24 = arith.maximumf %22, %23 : vector<8x128xf32>
    %25 = arith.truncf %24 : vector<8x128xf32> to vector<8x128xbf16>
    %c640_16 = arith.constant 640 : index
    %c0_17 = arith.constant 0 : index
    %26 = vector.load %arg3[%c640_16, %c0_17] : memref<768x128xbf16, #tpu.memory_space<vmem>>, vector<128x128xbf16>
    %cst_18 = arith.constant dense<0.000000e+00> : vector<8x128xf32>
    %27 = tpu.matmul %25, %26, %cst_18 {dimension_numbers = #tpu.dot_dimension_numbers<[1], [0], [0], [1], [0, 0, 1, 1], [], []>} : vector<8x128xbf16>, vector<128x128xbf16>, vector<8x128xf32> -> vector<8x128xf32>
    %c0_19 = arith.constant 0 : index
    %c768 = arith.constant 768 : index
    %28 = vector.load %arg4[%c0_19, %c768] : memref<1x896xf32, #tpu.memory_space<vmem>>, vector<1x128xf32>
    %29 = vector.broadcast %28 : vector<1x128xf32> to vector<8x128xf32>
    %30 = arith.addf %27, %29 : vector<8x128xf32>
    %c0_20 = arith.constant 0 : index
    %c0_21 = arith.constant 0 : index
    %31 = vector.load %arg5[%c0_20, %c0_21] : memref<8x128xf32, #tpu.memory_space<vmem>>, vector<8x128xf32>
    tpu.vector_store %arg5[%c0_20, %c0_21], %30 {strides = array<i32>} : memref<8x128xf32, #tpu.memory_space<vmem>>, vector<8x128xf32>,
    return
  }
  func.func @transform_0(%arg0: i32) -> (i32, i32) {
    %c0_i32 = arith.constant 0 : i32
    %c0_i32_0 = arith.constant 0 : i32
    return %arg0, %c0_i32 : i32, i32
  }
  func.func @transform_1(%arg0: i32) -> (i32, i32) {
    %c0_i32 = arith.constant 0 : i32
    %c0_i32_0 = arith.constant 0 : i32
    %c0_i32_1 = arith.constant 0 : i32
    return %c0_i32, %c0_i32_0 : i32, i32
  }
  func.func @transform_2(%arg0: i32) -> (i32, i32) {
    %c0_i32 = arith.constant 0 : i32
    %c0_i32_0 = arith.constant 0 : i32
    %c0_i32_1 = arith.constant 0 : i32
    return %c0_i32, %c0_i32_0 : i32, i32
  }
  func.func @transform_3(%arg0: i32) -> (i32, i32) {
    %c0_i32 = arith.constant 0 : i32
    %c0_i32_0 = arith.constant 0 : i32
    %c0_i32_1 = arith.constant 0 : i32
    return %c0_i32, %c0_i32_0 : i32, i32
  }
  func.func @transform_4(%arg0: i32) -> (i32, i32) {
    %c0_i32 = arith.constant 0 : i32
    %c0_i32_0 = arith.constant 0 : i32
    return %arg0, %c0_i32 : i32, i32
  }
}

</mosaic_0001>

<bundles_post_ra>
// kernel: model_no_conv_forward.1
= control target key start
LH: loop header
LB: loop body
LE: loop exit
PB: predicated region body
PF: predicated region fallthrough
CT: control target
= control target key end

     0   :  { %v3474_v38 = vmov 1983009808   ;;  %v41_v40 = vlaneseq  ;;  %vm3476_vm0 = vmmov 0   ;;  %s4512_s1 = inlined_call_operand.vmem [shape: bf16[1024,512], index: 1, kind: input, shape index: {}]   ;;  %s4513_s0 = inlined_call_operand.vmem [shape: f32[2,1024], index: 0, kind: input, shape index: {}]   ;;  %s4514_s2 = inlined_call_operand.vmem [shape: bf16[768,128], index: 2, kind: input, shape index: {}]   ;;  %s4515_s3 = inlined_call_operand.vmem [shape: f32[1,896], index: 3, kind: input, shape index: {}]   ;;  %s4516_s4 = inlined_call_operand.vmem [shape: f32[8,128], index: 4, kind: output, shape index: {}]  }
   0x1   :  { %v3030_v0 = vld [vmem:[%s4512_s1 + $0x4] ss:$16 sps:$4 sm:$0xff]   ;;  %v3032_v1 = vld [vmem:[%s4512_s1 + $0xc] ss:$16 sps:$4 sm:$0xff]   ;;  %v3034_v2 = vld [vmem:[%s4512_s1] ss:$16 sps:$4 sm:$0xff]   ;;  %v39_v39 = vunpack.c.l.s4 %v3474_v38 }
   0x2   :  { %1680 = vmatprep.subr.bf16.mxu0 %v3030_v0  ;;  %v3035_v3 = vld [vmem:[%s4512_s1 + $0x8] ss:$16 sps:$4 sm:$0xff]   ;;  %1844 = vmatprep.subr.bf16.mxu1 %v3032_v1  ;;  %v3036_v4 = vld [vmem:[%s4512_s1 + $0x24] ss:$16 sps:$4 sm:$0xff]   ;;  %v3038_v5 = vld [vmem:[%s4512_s1 + $0x2c] ss:$16 sps:$4 sm:$0xff]  }
   0x3   :  { %1681 = vmatpush1.bf16.msra.mxu0 %v3034_v2  ;;  %1845 = vmatpush1.bf16.msra.mxu1 %v3035_v3  ;;  %v3040_v6 = vld [vmem:[%s4512_s1 + $0x20] ss:$16 sps:$4 sm:$0xff]   ;;  %v3041_v7 = vld [vmem:[%s4512_s1 + $0x28] ss:$16 sps:$4 sm:$0xff]   ;;  %v3042_v8 = vld [vmem:[%s4512_s1 + $0x44] ss:$16 sps:$4 sm:$0xff]   ;;  %v40_v45 = vunpack.c.0.s8 %v39_v39 }
   0x4   :  { %1682 = vmatprep.subr.bf16.mxu0 %v3036_v4  ;;  %1846 = vmatprep.subr.bf16.mxu1 %v3038_v5  ;;  %v3044_v9 = vld [vmem:[%s4512_s1 + $0x4c] ss:$16 sps:$4 sm:$0xff]   ;;  %v3046_v10 = vld [vmem:[%s4512_s1 + $0x40] ss:$16 sps:$4 sm:$0xff]   ;;  %v3047_v11 = vld [vmem:[%s4512_s1 + $0x48] ss:$16 sps:$4 sm:$0xff]  }
   0x5   :  { %v3048_v12 = vld [vmem:[%s4512_s1 + $0x64] ss:$16 sps:$4 sm:$0xff]   ;;  %v3050_v13 = vld [vmem:[%s4512_s1 + $0x6c] ss:$16 sps:$4 sm:$0xff]   ;;  %v3052_v14 = vld [vmem:[%s4512_s1 + $0x60] ss:$16 sps:$4 sm:$0xff]  }
   0x6   :  { %v3053_v15 = vld [vmem:[%s4512_s1 + $0x68] ss:$16 sps:$4 sm:$0xff]   ;;  %v3054_v16 = vld [vmem:[%s4512_s1 + $0x84] ss:$16 sps:$4 sm:$0xff]   ;;  %v3056_v17 = vld [vmem:[%s4512_s1 + $0x8c] ss:$16 sps:$4 sm:$0xff]  }
   0x7   :  { %1683 = vmatpush1.bf16.msra.mxu0 %v3040_v6  ;;  %1847 = vmatpush1.bf16.msra.mxu1 %v3041_v7  ;;  %v3058_v18 = vld [vmem:[%s4512_s1 + $0x80] ss:$16 sps:$4 sm:$0xff]   ;;  %v3059_v19 = vld [vmem:[%s4512_s1 + $0x88] ss:$16 sps:$4 sm:$0xff]   ;;  %v3060_v20 = vld [vmem:[%s4512_s1 + $0xa4] ss:$16 sps:$4 sm:$0xff]  }
   0x8   :  { %1684 = vmatprep.subr.bf16.mxu0 %v3042_v8  ;;  %1848 = vmatprep.subr.bf16.mxu1 %v3044_v9  ;;  %v3062_v21 = vld [vmem:[%s4512_s1 + $0xac] ss:$16 sps:$4 sm:$0xff]   ;;  %v3064_v22 = vld [vmem:[%s4512_s1 + $0xa0] ss:$16 sps:$4 sm:$0xff]   ;;  %v3065_v23 = vld [vmem:[%s4512_s1 + $0xa8] ss:$16 sps:$4 sm:$0xff]  }
   0x9   :  { %v3066_v24 = vld [vmem:[%s4512_s1 + $0xc4] ss:$16 sps:$4 sm:$0xff]   ;;  %v3068_v25 = vld [vmem:[%s4512_s1 + $0xcc] ss:$16 sps:$4 sm:$0xff]   ;;  %v3070_v26 = vld [vmem:[%s4512_s1 + $0xc0] ss:$16 sps:$4 sm:$0xff]  }
   0xa   :  { %v3071_v27 = vld [vmem:[%s4512_s1 + $0xc8] ss:$16 sps:$4 sm:$0xff]   ;;  %v3072_v28 = vld [vmem:[%s4512_s1 + $0xe4] ss:$16 sps:$4 sm:$0xff]   ;;  %v3074_v29 = vld [vmem:[%s4512_s1 + $0xec] ss:$16 sps:$4 sm:$0xff]  }
   0xb   :  { %1685 = vmatpush1.bf16.msra.mxu0 %v3046_v10  ;;  %1849 = vmatpush1.bf16.msra.mxu1 %v3047_v11  ;;  %v3076_v30 = vld [vmem:[%s4512_s1 + $0xe0] ss:$16 sps:$4 sm:$0xff]   ;;  %v3077_v31 = vld [vmem:[%s4512_s1 + $0xe8] ss:$16 sps:$4 sm:$0xff]   ;;  %v3078_v32 = vld [vmem:[%s4512_s1 + $0x104] ss:$16 sps:$4 sm:$0xff]  }
   0xc   :  { %1686 = vmatprep.subr.bf16.mxu0 %v3048_v12  ;;  %1850 = vmatprep.subr.bf16.mxu1 %v3050_v13  ;;  %v3080_v33 = vld [vmem:[%s4512_s1 + $0x10c] ss:$16 sps:$4 sm:$0xff]   ;;  %v3082_v34 = vld [vmem:[%s4512_s1 + $0x100] ss:$16 sps:$4 sm:$0xff]   ;;  %v3083_v35 = vld [vmem:[%s4512_s1 + $0x108] ss:$16 sps:$4 sm:$0xff]  }
   0xd   :  { %v3084_v36 = vld [vmem:[%s4512_s1 + $0x124] ss:$16 sps:$4 sm:$0xff]   ;;  %v3086_v37 = vld [vmem:[%s4512_s1 + $0x12c] ss:$16 sps:$4 sm:$0xff]   ;;  %v3088_v41 = vld [vmem:[%s4512_s1 + $0x120] ss:$16 sps:$4 sm:$0xff]  }
   0xe   :  { %v3089_v42 = vld [vmem:[%s4512_s1 + $0x128] ss:$16 sps:$4 sm:$0xff]   ;;  %v3090_v43 = vld [vmem:[%s4512_s1 + $0x144] ss:$16 sps:$4 sm:$0xff]   ;;  %v3092_v44 = vld [vmem:[%s4512_s1 + $0x14c] ss:$16 sps:$4 sm:$0xff]  }
   0xf   :  { %1687 = vmatpush1.bf16.msra.mxu0 %v3052_v14  ;;  %1851 = vmatpush1.bf16.msra.mxu1 %v3053_v15  ;;  %v3628_v46 = vshrl.u32 %v41_v40, 7  ;;  %v3094_v47 = vld [vmem:[%s4512_s1 + $0x140] ss:$16 sps:$4 sm:$0xff]   ;;  %v3095_v48 = vld [vmem:[%s4512_s1 + $0x148] ss:$16 sps:$4 sm:$0xff]  }
  0x10   :  { %1688 = vmatprep.subr.bf16.mxu0 %v3054_v16  ;;  %1852 = vmatprep.subr.bf16.mxu1 %v3056_v17  ;;  %v3096_v49 = vld [vmem:[%s4512_s1 + $0x164] ss:$16 sps:$4 sm:$0xff]   ;;  %v3098_v50 = vld [vmem:[%s4512_s1 + $0x16c] ss:$16 sps:$4 sm:$0xff]   ;;  %v3100_v51 = vld [vmem:[%s4512_s1 + $0x160] ss:$16 sps:$4 sm:$0xff]  }
  0x11   :  { %v3101_v52 = vld [vmem:[%s4512_s1 + $0x168] ss:$16 sps:$4 sm:$0xff]   ;;  %v3649_v53 = vsub.s32 %v40_v45, %v3628_v46  ;;  %v3102_v54 = vld [vmem:[%s4512_s1 + $0x184] ss:$16 sps:$4 sm:$0xff]   ;;  %v3126_v55 = vld [vmem:[%s4513_s0] ss:$16 sps:$4 sm:$0xff]  }
  0x12   :  { %v3129_v56 = vld [vmem:[%s4513_s0 + $0x20] ss:$16 sps:$4 sm:$0xff]   ;;  %v3104_v57 = vld [vmem:[%s4512_s1 + $0x18c] ss:$16 sps:$4 sm:$0xff]   ;;  %v3107_v61 = vld [vmem:[%s4512_s1 + $0x188] ss:$16 sps:$4 sm:$0xff]  }
  0x13   :  { %1689 = vmatpush1.bf16.msra.mxu0 %v3058_v18  ;;  %1853 = vmatpush1.bf16.msra.mxu1 %v3059_v19  ;;  %v44_v58 = vrot.slane %v3126_v55, %v3649_v53  ;;  %v58_v59 = vrot.slane %v3129_v56, %v3649_v53  ;;  %v3106_v60 = vld [vmem:[%s4512_s1 + $0x180] ss:$16 sps:$4 sm:$0xff]   ;;  %v3108_v62 = vld [vmem:[%s4512_s1 + $0x1a4] ss:$16 sps:$4 sm:$0xff]   ;;  %v3110_v0 = vld [vmem:[%s4512_s1 + $0x1ac] ss:$16 sps:$4 sm:$0xff]  }
  0x14   :  { %1690 = vmatprep.subr.bf16.mxu0 %v3060_v20  ;;  %1854 = vmatprep.subr.bf16.mxu1 %v3062_v21  ;;  %v3112_v2 = vld [vmem:[%s4512_s1 + $0x1a0] ss:$16 sps:$4 sm:$0xff]   ;;  %v3113_v3 = vld [vmem:[%s4512_s1 + $0x1a8] ss:$16 sps:$4 sm:$0xff]   ;;  %v3114_v4 = vld [vmem:[%s4512_s1 + $0x1c4] ss:$16 sps:$4 sm:$0xff]  }
  0x15   :  { %v67_v63 = vcombine.high %v44_v58, %v58_v59  ;;  %v3116_v5 = vld [vmem:[%s4512_s1 + $0x1cc] ss:$16 sps:$4 sm:$0xff]   ;;  %v3128_v6 = vld [vmem:[%s4513_s0 + $0x4] ss:$16 sps:$4 sm:$0xff]   ;;  %v3118_v8 = vld [vmem:[%s4512_s1 + $0x1c0] ss:$16 sps:$4 sm:$0xff]   ;;  %v66_v16 = vcombine.low %v44_v58, %v58_v59 }
  0x16   :  { %v3131_v7 = vld [vmem:[%s4513_s0 + $0x24] ss:$16 sps:$4 sm:$0xff]   ;;  %v3119_v9 = vld [vmem:[%s4512_s1 + $0x1c8] ss:$16 sps:$4 sm:$0xff]   ;;  %v3122_v11 = vld [vmem:[%s4512_s1 + $0x1ec] ss:$16 sps:$4 sm:$0xff]   ;;  %v3708_v12 = vrot.slane %v3128_v6, %v3649_v53 }
  0x17   :  { %1691 = vmatpush1.bf16.msra.mxu0 %v3064_v22  ;;  %1855 = vmatpush1.bf16.msra.mxu1 %v3065_v23  ;;  %v115_v1 = vpack.c.bf16 %v67_v63, %v67_v63  ;;  %v3120_v10 = vld [vmem:[%s4512_s1 + $0x1e4] ss:$16 sps:$4 sm:$0xff]   ;;  %v3711_v13 = vrot.slane %v3131_v7, %v3649_v53  ;;  %v3124_v14 = vld [vmem:[%s4512_s1 + $0x1e0] ss:$16 sps:$4 sm:$0xff]   ;;  %v3125_v15 = vld [vmem:[%s4512_s1 + $0x1e8] ss:$16 sps:$4 sm:$0xff]   ;;  %v114_v22 = vpack.c.bf16 %v66_v16, %v66_v16 }
  0x18   :  { %1692 = vmatprep.subr.bf16.mxu0 %v3066_v24  ;;  %1856 = vmatprep.subr.bf16.mxu1 %v3068_v25  ;;  %v3134_v17 = vld [vmem:[%s4512_s1 + $0x204] ss:$16 sps:$4 sm:$0xff]   ;;  %v3137_v18 = vld [vmem:[%s4512_s1 + $0x20c] ss:$16 sps:$4 sm:$0xff]   ;;  %v3132_v20 = vld [vmem:[%s4512_s1 + $0x200] ss:$16 sps:$4 sm:$0xff]  }
  0x19   :  { %1712 = vmatprep.mubr.bf16.mxu0 %v115_v1  ;;  %1876 = vmatprep.mubr.bf16.mxu1 %v115_v1  ;;  %v69_v19 = vcombine.high %v3708_v12, %v3711_v13  ;;  %v3135_v21 = vld [vmem:[%s4512_s1 + $0x208] ss:$16 sps:$4 sm:$0xff]   ;;  %v3140_v23 = vld [vmem:[%s4512_s1 + $0x224] ss:$16 sps:$4 sm:$0xff]   ;;  %v3143_v24 = vld [vmem:[%s4512_s1 + $0x22c] ss:$16 sps:$4 sm:$0xff]  }
  0x1a   :  { %v3156_v38 = vld [vmem:[%s4512_s1 + $0x280] ss:$16 sps:$4 sm:$0xff]   ;;  %v3159_v39 = vld [vmem:[%s4512_s1 + $0x288] ss:$16 sps:$4 sm:$0xff]   ;;  %v3164_v40 = vld [vmem:[%s4512_s1 + $0x2a4] ss:$16 sps:$4 sm:$0xff]  }
  0x1b   :  { %1693 = vmatpush1.bf16.msra.mxu0 %v3070_v26  ;;  %1857 = vmatpush1.bf16.msra.mxu1 %v3071_v27  ;;  %v117_v25 = vpack.c.bf16 %v69_v19, %v69_v19  ;;  %v3138_v26 = vld [vmem:[%s4512_s1 + $0x220] ss:$16 sps:$4 sm:$0xff]   ;;  %v3141_v27 = vld [vmem:[%s4512_s1 + $0x228] ss:$16 sps:$4 sm:$0xff]   ;;  %v3173_v45 = vld [vmem:[%s4512_s1 + $0x2cc] ss:$16 sps:$4 sm:$0xff]  }
  0x1c   :  { %1694 = vmatprep.subr.bf16.mxu0 %v3072_v28  ;;  %1858 = vmatprep.subr.bf16.mxu1 %v3074_v29  ;;  %v3146_v28 = vld [vmem:[%s4512_s1 + $0x244] ss:$16 sps:$4 sm:$0xff]   ;;  %v3149_v29 = vld [vmem:[%s4512_s1 + $0x24c] ss:$16 sps:$4 sm:$0xff]   ;;  %v3180_v56 = vld [vmem:[%s4512_s1 + $0x300] ss:$16 sps:$4 sm:$0xff]  }
  0x1d   :  { %v3185_v55 = vld [vmem:[%s4512_s1 + $0x30c] ss:$16 sps:$4 sm:$0xff]   ;;  %v3188_v58 = vld [vmem:[%s4512_s1 + $0x324] ss:$16 sps:$4 sm:$0xff]   ;;  %v3195_v1 = vld [vmem:[%s4512_s1 + $0x348] ss:$16 sps:$4 sm:$0xff]  }
  0x1e   :  { %v3191_v59 = vld [vmem:[%s4512_s1 + $0x32c] ss:$16 sps:$4 sm:$0xff]   ;;  %v3206_v6 = vld [vmem:[%s4512_s1 + $0x384] ss:$16 sps:$4 sm:$0xff]   ;;  %v3219_v19 = vld [vmem:[%s4512_s1 + $0x3c8] ss:$16 sps:$4 sm:$0xff]  }
  0x1f   :  { %1695 = vmatpush1.bf16.msra.mxu0 %v3076_v30  ;;  %1859 = vmatpush1.bf16.msra.mxu1 %v3077_v31  ;;  %v3144_v30 = vld [vmem:[%s4512_s1 + $0x240] ss:$16 sps:$4 sm:$0xff]   ;;  %v3147_v31 = vld [vmem:[%s4512_s1 + $0x248] ss:$16 sps:$4 sm:$0xff]   ;;  %v3197_v63 = vld [vmem:[%s4512_s1 + $0x34c] ss:$16 sps:$4 sm:$0xff]  }
  0x20   :  { %1696 = vmatprep.subr.bf16.mxu0 %v3078_v32  ;;  %1860 = vmatprep.subr.bf16.mxu1 %v3080_v33  ;;  %v3152_v32 = vld [vmem:[%s4512_s1 + $0x264] ss:$16 sps:$4 sm:$0xff]   ;;  %v3155_v33 = vld [vmem:[%s4512_s1 + $0x26c] ss:$16 sps:$4 sm:$0xff]  }
  0x21   :  { %v3209_v7 = vld [vmem:[%s4512_s1 + $0x38c] ss:$16 sps:$4 sm:$0xff]   ;;  %v3218_v16 = vld [vmem:[%s4512_s1 + $0x3c4] ss:$16 sps:$4 sm:$0xff]  }
  0x23   :  { %1697 = vmatpush1.bf16.msra.mxu0 %v3082_v34  ;;  %1861 = vmatpush1.bf16.msra.mxu1 %v3083_v35  ;;  %v3150_v34 = vld [vmem:[%s4512_s1 + $0x260] ss:$16 sps:$4 sm:$0xff]   ;;  %v3153_v35 = vld [vmem:[%s4512_s1 + $0x268] ss:$16 sps:$4 sm:$0xff]  }
  0x24   :  { %1698 = vmatprep.subr.bf16.mxu0 %v3084_v36  ;;  %1862 = vmatprep.subr.bf16.mxu1 %v3086_v37  ;;  %v3158_v36 = vld [vmem:[%s4512_s1 + $0x284] ss:$16 sps:$4 sm:$0xff]   ;;  %v3161_v37 = vld [vmem:[%s4512_s1 + $0x28c] ss:$16 sps:$4 sm:$0xff]  }
  0x27   :  { %1699 = vmatpush1.bf16.msra.mxu0 %v3088_v41  ;;  %1863 = vmatpush1.bf16.msra.mxu1 %v3089_v42  ;;  %v3167_v41 = vld [vmem:[%s4512_s1 + $0x2ac] ss:$16 sps:$4 sm:$0xff]   ;;  %v3162_v42 = vld [vmem:[%s4512_s1 + $0x2a0] ss:$16 sps:$4 sm:$0xff]  }
  0x28   :  { %1700 = vmatprep.subr.bf16.mxu0 %v3090_v43  ;;  %1864 = vmatprep.subr.bf16.mxu1 %v3092_v44  ;;  %v3165_v43 = vld [vmem:[%s4512_s1 + $0x2a8] ss:$16 sps:$4 sm:$0xff]   ;;  %v3170_v44 = vld [vmem:[%s4512_s1 + $0x2c4] ss:$16 sps:$4 sm:$0xff]  }
  0x2b   :  { %1701 = vmatpush1.bf16.msra.mxu0 %v3094_v47  ;;  %1865 = vmatpush1.bf16.msra.mxu1 %v3095_v48  ;;  %v3168_v47 = vld [vmem:[%s4512_s1 + $0x2c0] ss:$16 sps:$4 sm:$0xff]   ;;  %v3171_v48 = vld [vmem:[%s4512_s1 + $0x2c8] ss:$16 sps:$4 sm:$0xff]  }
  0x2c   :  { %1702 = vmatprep.subr.bf16.mxu0 %v3096_v49  ;;  %1866 = vmatprep.subr.bf16.mxu1 %v3098_v50  ;;  %v3176_v49 = vld [vmem:[%s4512_s1 + $0x2e4] ss:$16 sps:$4 sm:$0xff]   ;;  %v3179_v50 = vld [vmem:[%s4512_s1 + $0x2ec] ss:$16 sps:$4 sm:$0xff]  }
  0x2f   :  { %1703 = vmatpush1.bf16.msra.mxu0 %v3100_v51  ;;  %1867 = vmatpush1.bf16.msra.mxu1 %v3101_v52  ;;  %v3174_v51 = vld [vmem:[%s4512_s1 + $0x2e0] ss:$16 sps:$4 sm:$0xff]   ;;  %v3177_v52 = vld [vmem:[%s4512_s1 + $0x2e8] ss:$16 sps:$4 sm:$0xff]  }
  0x30   :  { %1704 = vmatprep.subr.bf16.mxu0 %v3102_v54  ;;  %1868 = vmatprep.subr.bf16.mxu1 %v3104_v57  ;;  %v3182_v54 = vld [vmem:[%s4512_s1 + $0x304] ss:$16 sps:$4 sm:$0xff]   ;;  %v3183_v57 = vld [vmem:[%s4512_s1 + $0x308] ss:$16 sps:$4 sm:$0xff]  }
  0x33   :  { %1705 = vmatpush1.bf16.msra.mxu0 %v3106_v60  ;;  %1869 = vmatpush1.bf16.msra.mxu1 %v3107_v61  ;;  %v3186_v60 = vld [vmem:[%s4512_s1 + $0x320] ss:$16 sps:$4 sm:$0xff]   ;;  %v3189_v61 = vld [vmem:[%s4512_s1 + $0x328] ss:$16 sps:$4 sm:$0xff]  }
  0x34   :  { %1706 = vmatprep.subr.bf16.mxu0 %v3108_v62  ;;  %1870 = vmatprep.subr.bf16.mxu1 %v3110_v0  ;;  %v3194_v62 = vld [vmem:[%s4512_s1 + $0x344] ss:$16 sps:$4 sm:$0xff]   ;;  %v3192_v0 = vld [vmem:[%s4512_s1 + $0x340] ss:$16 sps:$4 sm:$0xff]  }
  0x37   :  { %1707 = vmatpush1.bf16.msra.mxu0 %v3112_v2  ;;  %1871 = vmatpush1.bf16.msra.mxu1 %v3113_v3  ;;  %v3200_v2 = vld [vmem:[%s4512_s1 + $0x364] ss:$16 sps:$4 sm:$0xff]   ;;  %v3203_v3 = vld [vmem:[%s4512_s1 + $0x36c] ss:$16 sps:$4 sm:$0xff]  }
  0x38   :  { %1708 = vmatprep.subr.bf16.mxu0 %v3114_v4  ;;  %1872 = vmatprep.subr.bf16.mxu1 %v3116_v5  ;;  %v3198_v4 = vld [vmem:[%s4512_s1 + $0x360] ss:$16 sps:$4 sm:$0xff]   ;;  %v3201_v5 = vld [vmem:[%s4512_s1 + $0x368] ss:$16 sps:$4 sm:$0xff]  }
  0x3b   :  { %1709 = vmatpush1.bf16.msra.mxu0 %v3118_v8  ;;  %1873 = vmatpush1.bf16.msra.mxu1 %v3119_v9  ;;  %v3204_v8 = vld [vmem:[%s4512_s1 + $0x380] ss:$16 sps:$4 sm:$0xff]   ;;  %v3207_v9 = vld [vmem:[%s4512_s1 + $0x388] ss:$16 sps:$4 sm:$0xff]  }
  0x3c   :  { %1710 = vmatprep.subr.bf16.mxu0 %v3120_v10  ;;  %1874 = vmatprep.subr.bf16.mxu1 %v3122_v11  ;;  %v3212_v10 = vld [vmem:[%s4512_s1 + $0x3a4] ss:$16 sps:$4 sm:$0xff]   ;;  %v3215_v11 = vld [vmem:[%s4512_s1 + $0x3ac] ss:$16 sps:$4 sm:$0xff]  }
  0x3f   :  { %1711 = vmatpush1.bf16.msra.mxu0 %v3124_v14  ;;  %1875 = vmatpush1.bf16.msra.mxu1 %v3125_v15  ;;  %v3210_v14 = vld [vmem:[%s4512_s1 + $0x3a0] ss:$16 sps:$4 sm:$0xff]   ;;  %v3213_v15 = vld [vmem:[%s4512_s1 + $0x3a8] ss:$16 sps:$4 sm:$0xff]  }
  0x40   :  { %1721 = vmatprep.subr.bf16.mxu0 %v3134_v17  ;;  %1885 = vmatprep.subr.bf16.mxu1 %v3137_v18  ;;  %v3221_v17 = vld [vmem:[%s4512_s1 + $0x3cc] ss:$16 sps:$4 sm:$0xff]   ;;  %v3216_v18 = vld [vmem:[%s4512_s1 + $0x3c0] ss:$16 sps:$4 sm:$0xff]  }
  0x42   :  { %1713 = vmatmul.mubr.bf16.vlgmr.msra.gmra.mrb[0].mxu0 %v114_v22  ;;  %1877 = vmatmul.mubr.bf16.vlgmr.msra.gmra.mrb[0].mxu1 %v114_v22  ;;  %v3222_v22 = vld [vmem:[%s4512_s1 + $0x3e0] ss:$16 sps:$4 sm:$0xff]  }
  0x43   :  { %1722 = vmatpush1.bf16.msra.mxu0 %v3132_v20  ;;  %1886 = vmatpush1.bf16.msra.mxu1 %v3135_v21  ;;  %v3224_v20 = vld [vmem:[%s4512_s1 + $0x3e4] ss:$16 sps:$4 sm:$0xff]   ;;  %v3227_v21 = vld [vmem:[%s4512_s1 + $0x3ec] ss:$16 sps:$4 sm:$0xff]  }
  0x44   :  { %1723 = vmatprep.subr.bf16.mxu0 %v3140_v23  ;;  %1887 = vmatprep.subr.bf16.mxu1 %v3143_v24  ;;  %v3225_v23 = vld [vmem:[%s4512_s1 + $0x3e8] ss:$16 sps:$4 sm:$0xff]   ;;  %v68_v24 = vcombine.low %v3708_v12, %v3711_v13 }
  0x45   :  { %1753 = vmatprep.mubr.bf16.mxu0 %v117_v25  ;;  %1917 = vmatprep.mubr.bf16.mxu1 %v117_v25  ;;  %v3230_v25 = vld [vmem:[%s4512_s1 + $0x404] ss:$16 sps:$4 sm:$0xff]   ;;  %v3231_v12 = vld [vmem:[%s4512_s1 + $0x408] ss:$16 sps:$4 sm:$0xff]  }
  0x46   :  { %v116_v13 = vpack.c.bf16 %v68_v24, %v68_v24  ;;  %v3306_v24 = vld [vmem:[%s4512_s1 + $0x5a0] ss:$16 sps:$4 sm:$0xff]  }
  0x47   :  { %1724 = vmatpush1.bf16.msra.mxu0 %v3138_v26  ;;  %1888 = vmatpush1.bf16.msra.mxu1 %v3141_v27  ;;  %v3233_v26 = vld [vmem:[%s4512_s1 + $0x40c] ss:$16 sps:$4 sm:$0xff]   ;;  %v3228_v27 = vld [vmem:[%s4512_s1 + $0x400] ss:$16 sps:$4 sm:$0xff]  }
  0x48   :  { %1725 = vmatprep.subr.bf16.mxu0 %v3146_v28  ;;  %1889 = vmatprep.subr.bf16.mxu1 %v3149_v29  ;;  %v3236_v28 = vld [vmem:[%s4512_s1 + $0x424] ss:$16 sps:$4 sm:$0xff]   ;;  %v3239_v29 = vld [vmem:[%s4512_s1 + $0x42c] ss:$16 sps:$4 sm:$0xff]  }
  0x4b   :  { %1726 = vmatpush1.bf16.msra.mxu0 %v3144_v30  ;;  %1890 = vmatpush1.bf16.msra.mxu1 %v3147_v31  ;;  %v3234_v30 = vld [vmem:[%s4512_s1 + $0x420] ss:$16 sps:$4 sm:$0xff]   ;;  %v3237_v31 = vld [vmem:[%s4512_s1 + $0x428] ss:$16 sps:$4 sm:$0xff]  }
  0x4c   :  { %1727 = vmatprep.subr.bf16.mxu0 %v3152_v32  ;;  %1891 = vmatprep.subr.bf16.mxu1 %v3155_v33  ;;  %v3324_v32 = vld [vmem:[%s4513_s0 + $0x8] ss:$16 sps:$4 sm:$0xff]  }
  0x4d   :  { %v3326_v33 = vld [vmem:[%s4513_s0 + $0x28] ss:$16 sps:$4 sm:$0xff]  }
  0x4f   :  { %1728 = vmatpush1.bf16.msra.mxu0 %v3150_v34  ;;  %1892 = vmatpush1.bf16.msra.mxu1 %v3153_v35  ;;  %v3242_v34 = vld [vmem:[%s4512_s1 + $0x444] ss:$16 sps:$4 sm:$0xff]   ;;  %v3245_v35 = vld [vmem:[%s4512_s1 + $0x44c] ss:$16 sps:$4 sm:$0xff]  }
  0x50   :  { %1729 = vmatprep.subr.bf16.mxu0 %v3158_v36  ;;  %1893 = vmatprep.subr.bf16.mxu1 %v3161_v37  ;;  %v3952_v36 = vrot.slane %v3324_v32, %v3649_v53  ;;  %v3955_v37 = vrot.slane %v3326_v33, %v3649_v53  ;;  %v3318_v32 = vld [vmem:[%s4512_s1 + $0x5e0] ss:$16 sps:$4 sm:$0xff]  }
  0x53   :  { %1730 = vmatpush1.bf16.msra.mxu0 %v3156_v38  ;;  %1894 = vmatpush1.bf16.msra.mxu1 %v3159_v39  ;;  %v3240_v38 = vld [vmem:[%s4512_s1 + $0x440] ss:$16 sps:$4 sm:$0xff]   ;;  %v3243_v39 = vld [vmem:[%s4512_s1 + $0x448] ss:$16 sps:$4 sm:$0xff]  }
  0x54   :  { %1731 = vmatprep.subr.bf16.mxu0 %v3164_v40  ;;  %1895 = vmatprep.subr.bf16.mxu1 %v3167_v41  ;;  %v103_v40 = vcombine.high %v3952_v36, %v3955_v37  ;;  %v3248_v41 = vld [vmem:[%s4512_s1 + $0x464] ss:$16 sps:$4 sm:$0xff]  }
  0x57   :  { %1732 = vmatpush1.bf16.msra.mxu0 %v3162_v42  ;;  %1896 = vmatpush1.bf16.msra.mxu1 %v3165_v43  ;;  %v3251_v42 = vld [vmem:[%s4512_s1 + $0x46c] ss:$16 sps:$4 sm:$0xff]   ;;  %v119_v43 = vpack.c.bf16 %v103_v40, %v103_v40  ;;  %v3328_v40 = vld [vmem:[%s4512_s1 + $0x600] ss:$16 sps:$4 sm:$0xff]  }
  0x58   :  { %1733 = vmatprep.subr.bf16.mxu0 %v3170_v44  ;;  %1897 = vmatprep.subr.bf16.mxu1 %v3173_v45  ;;  %v3246_v44 = vld [vmem:[%s4512_s1 + $0x460] ss:$16 sps:$4 sm:$0xff]   ;;  %v3249_v45 = vld [vmem:[%s4512_s1 + $0x468] ss:$16 sps:$4 sm:$0xff]  }
  0x5b   :  { %1734 = vmatpush1.bf16.msra.mxu0 %v3168_v47  ;;  %1898 = vmatpush1.bf16.msra.mxu1 %v3171_v48  ;;  %v3254_v47 = vld [vmem:[%s4512_s1 + $0x484] ss:$16 sps:$4 sm:$0xff]   ;;  %v3257_v48 = vld [vmem:[%s4512_s1 + $0x48c] ss:$16 sps:$4 sm:$0xff]  }
  0x5c   :  { %1735 = vmatprep.subr.bf16.mxu0 %v3176_v49  ;;  %1899 = vmatprep.subr.bf16.mxu1 %v3179_v50  ;;  %v3252_v49 = vld [vmem:[%s4512_s1 + $0x480] ss:$16 sps:$4 sm:$0xff]   ;;  %v3255_v50 = vld [vmem:[%s4512_s1 + $0x488] ss:$16 sps:$4 sm:$0xff]  }
  0x5f   :  { %1736 = vmatpush1.bf16.msra.mxu0 %v3174_v51  ;;  %1900 = vmatpush1.bf16.msra.mxu1 %v3177_v52  ;;  %v3260_v51 = vld [vmem:[%s4512_s1 + $0x4a4] ss:$16 sps:$4 sm:$0xff]   ;;  %v3263_v52 = vld [vmem:[%s4512_s1 + $0x4ac] ss:$16 sps:$4 sm:$0xff]  }
  0x60   :  { %1737 = vmatprep.subr.bf16.mxu0 %v3182_v54  ;;  %1901 = vmatprep.subr.bf16.mxu1 %v3185_v55  ;;  %v3258_v54 = vld [vmem:[%s4512_s1 + $0x4a0] ss:$16 sps:$4 sm:$0xff]   ;;  %v3261_v55 = vld [vmem:[%s4512_s1 + $0x4a8] ss:$16 sps:$4 sm:$0xff]  }
  0x63   :  { %1738 = vmatpush1.bf16.msra.mxu0 %v3180_v56  ;;  %1902 = vmatpush1.bf16.msra.mxu1 %v3183_v57  ;;  %v3266_v56 = vld [vmem:[%s4512_s1 + $0x4c4] ss:$16 sps:$4 sm:$0xff]   ;;  %v3269_v57 = vld [vmem:[%s4512_s1 + $0x4cc] ss:$16 sps:$4 sm:$0xff]  }
  0x64   :  { %1739 = vmatprep.subr.bf16.mxu0 %v3188_v58  ;;  %1903 = vmatprep.subr.bf16.mxu1 %v3191_v59  ;;  %v3264_v58 = vld [vmem:[%s4512_s1 + $0x4c0] ss:$16 sps:$4 sm:$0xff]   ;;  %v3267_v59 = vld [vmem:[%s4512_s1 + $0x4c8] ss:$16 sps:$4 sm:$0xff]  }
  0x67   :  { %1740 = vmatpush1.bf16.msra.mxu0 %v3186_v60  ;;  %1904 = vmatpush1.bf16.msra.mxu1 %v3189_v61  ;;  %v3272_v60 = vld [vmem:[%s4512_s1 + $0x4e4] ss:$16 sps:$4 sm:$0xff]   ;;  %v3275_v61 = vld [vmem:[%s4512_s1 + $0x4ec] ss:$16 sps:$4 sm:$0xff]  }
  0x68   :  { %1741 = vmatprep.subr.bf16.mxu0 %v3194_v62  ;;  %1905 = vmatprep.subr.bf16.mxu1 %v3197_v63  ;;  %v3270_v62 = vld [vmem:[%s4512_s1 + $0x4e0] ss:$16 sps:$4 sm:$0xff]   ;;  %v3273_v63 = vld [vmem:[%s4512_s1 + $0x4e8] ss:$16 sps:$4 sm:$0xff]  }
  0x6b   :  { %1742 = vmatpush1.bf16.msra.mxu0 %v3192_v0  ;;  %1906 = vmatpush1.bf16.msra.mxu1 %v3195_v1  ;;  %v3278_v0 = vld [vmem:[%s4512_s1 + $0x504] ss:$16 sps:$4 sm:$0xff]   ;;  %v3281_v1 = vld [vmem:[%s4512_s1 + $0x50c] ss:$16 sps:$4 sm:$0xff]  }
  0x6c   :  { %1743 = vmatprep.subr.bf16.mxu0 %v3200_v2  ;;  %1907 = vmatprep.subr.bf16.mxu1 %v3203_v3  ;;  %v3276_v2 = vld [vmem:[%s4512_s1 + $0x500] ss:$16 sps:$4 sm:$0xff]   ;;  %v3279_v3 = vld [vmem:[%s4512_s1 + $0x508] ss:$16 sps:$4 sm:$0xff]  }
  0x6f   :  { %1744 = vmatpush1.bf16.msra.mxu0 %v3198_v4  ;;  %1908 = vmatpush1.bf16.msra.mxu1 %v3201_v5  ;;  %v3284_v4 = vld [vmem:[%s4512_s1 + $0x524] ss:$16 sps:$4 sm:$0xff]   ;;  %v3287_v5 = vld [vmem:[%s4512_s1 + $0x52c] ss:$16 sps:$4 sm:$0xff]  }
  0x70   :  { %1745 = vmatprep.subr.bf16.mxu0 %v3206_v6  ;;  %1909 = vmatprep.subr.bf16.mxu1 %v3209_v7  ;;  %v3282_v6 = vld [vmem:[%s4512_s1 + $0x520] ss:$16 sps:$4 sm:$0xff]   ;;  %v3285_v7 = vld [vmem:[%s4512_s1 + $0x528] ss:$16 sps:$4 sm:$0xff]  }
  0x73   :  { %1746 = vmatpush1.bf16.msra.mxu0 %v3204_v8  ;;  %1910 = vmatpush1.bf16.msra.mxu1 %v3207_v9  ;;  %v3290_v8 = vld [vmem:[%s4512_s1 + $0x544] ss:$16 sps:$4 sm:$0xff]   ;;  %v3293_v9 = vld [vmem:[%s4512_s1 + $0x54c] ss:$16 sps:$4 sm:$0xff]  }
  0x74   :  { %1747 = vmatprep.subr.bf16.mxu0 %v3212_v10  ;;  %1911 = vmatprep.subr.bf16.mxu1 %v3215_v11  ;;  %v3288_v10 = vld [vmem:[%s4512_s1 + $0x540] ss:$16 sps:$4 sm:$0xff]   ;;  %v3291_v11 = vld [vmem:[%s4512_s1 + $0x548] ss:$16 sps:$4 sm:$0xff]  }
  0x77   :  { %1748 = vmatpush1.bf16.msra.mxu0 %v3210_v14  ;;  %1912 = vmatpush1.bf16.msra.mxu1 %v3213_v15  ;;  %v3296_v14 = vld [vmem:[%s4512_s1 + $0x564] ss:$16 sps:$4 sm:$0xff]   ;;  %v3299_v15 = vld [vmem:[%s4512_s1 + $0x56c] ss:$16 sps:$4 sm:$0xff]  }
  0x78   :  { %1749 = vmatprep.subr.bf16.mxu0 %v3218_v16  ;;  %1913 = vmatprep.subr.bf16.mxu1 %v3221_v17  ;;  %v3294_v16 = vld [vmem:[%s4512_s1 + $0x560] ss:$16 sps:$4 sm:$0xff]   ;;  %v3297_v17 = vld [vmem:[%s4512_s1 + $0x568] ss:$16 sps:$4 sm:$0xff]  }
  0x7b   :  { %1750 = vmatpush1.bf16.msra.mxu0 %v3216_v18  ;;  %1914 = vmatpush1.bf16.msra.mxu1 %v3219_v19  ;;  %v3302_v18 = vld [vmem:[%s4512_s1 + $0x584] ss:$16 sps:$4 sm:$0xff]   ;;  %v3305_v19 = vld [vmem:[%s4512_s1 + $0x58c] ss:$16 sps:$4 sm:$0xff]  }
  0x7c   :  { %1751 = vmatprep.subr.bf16.mxu0 %v3224_v20  ;;  %1915 = vmatprep.subr.bf16.mxu1 %v3227_v21  ;;  %v3300_v20 = vld [vmem:[%s4512_s1 + $0x580] ss:$16 sps:$4 sm:$0xff]   ;;  %v3303_v21 = vld [vmem:[%s4512_s1 + $0x588] ss:$16 sps:$4 sm:$0xff]  }
  0x7f   :  { %1752 = vmatpush1.bf16.msra.mxu0 %v3222_v22  ;;  %1916 = vmatpush1.bf16.msra.mxu1 %v3225_v23  ;;  %v3308_v22 = vld [vmem:[%s4512_s1 + $0x5a4] ss:$16 sps:$4 sm:$0xff]   ;;  %v3311_v23 = vld [vmem:[%s4512_s1 + $0x5ac] ss:$16 sps:$4 sm:$0xff]  }
  0x80   :  { %1762 = vmatprep.subr.bf16.mxu0 %v3230_v25  ;;  %1926 = vmatprep.subr.bf16.mxu1 %v3233_v26  ;;  %v3309_v25 = vld [vmem:[%s4512_s1 + $0x5a8] ss:$16 sps:$4 sm:$0xff]   ;;  %v3314_v26 = vld [vmem:[%s4512_s1 + $0x5c4] ss:$16 sps:$4 sm:$0xff]  }
  0x82   :  { %1754 = vmatmul.mubr.bf16.vlgmr.msra.gmra.mrb[0].mxu0 %v116_v13  ;;  %1918 = vmatmul.mubr.bf16.vlgmr.msra.gmra.mrb[0].mxu1 %v116_v13  ;;  %v3312_v13 = vld [vmem:[%s4512_s1 + $0x5c0] ss:$16 sps:$4 sm:$0xff]  }
  0x83   :  { %1763 = vmatpush1.bf16.msra.mxu0 %v3228_v27  ;;  %1927 = vmatpush1.bf16.msra.mxu1 %v3231_v12  ;;  %v3317_v27 = vld [vmem:[%s4512_s1 + $0x5cc] ss:$16 sps:$4 sm:$0xff]  }
  0x84   :  { %1764 = vmatprep.subr.bf16.mxu0 %v3236_v28  ;;  %1928 = vmatprep.subr.bf16.mxu1 %v3239_v29  ;;  %v3424_v12 = vld [vmem:[%s4513_s0 + $0xc] ss:$16 sps:$4 sm:$0xff]   ;;  %v3315_v29 = vld [vmem:[%s4512_s1 + $0x5c8] ss:$16 sps:$4 sm:$0xff]  }
  0x85   :  { %1794 = vmatprep.mubr.bf16.mxu0 %v119_v43  ;;  %1958 = vmatprep.mubr.bf16.mxu1 %v119_v43  ;;  %v3425_v28 = vld [vmem:[%s4513_s0 + $0x2c] ss:$16 sps:$4 sm:$0xff]   ;;  %v4125_v33 = vrot.slane %v3424_v12, %v3649_v53 }
  0x86   :  { %v3339_v43 = vld [vmem:[%s4512_s1 + $0x62c] ss:$16 sps:$4 sm:$0xff]  }
  0x87   :  { %1765 = vmatpush1.bf16.msra.mxu0 %v3234_v30  ;;  %1929 = vmatpush1.bf16.msra.mxu1 %v3237_v31  ;;  %v3320_v30 = vld [vmem:[%s4512_s1 + $0x5e4] ss:$16 sps:$4 sm:$0xff]   ;;  %v3323_v31 = vld [vmem:[%s4512_s1 + $0x5ec] ss:$16 sps:$4 sm:$0xff]  }
  0x88   :  { %1766 = vmatprep.subr.bf16.mxu0 %v3242_v34  ;;  %1930 = vmatprep.subr.bf16.mxu1 %v3245_v35  ;;  %v4128_v34 = vrot.slane %v3425_v28, %v3649_v53  ;;  %v3321_v35 = vld [vmem:[%s4512_s1 + $0x5e8] ss:$16 sps:$4 sm:$0xff]   ;;  %v3333_v53 = vld [vmem:[%s4512_s1 + $0x60c] ss:$16 sps:$4 sm:$0xff]  }
  0x89   :  { %v3405_v12 = vld [vmem:[%s4512_s1 + $0x78c] ss:$16 sps:$4 sm:$0xff]   ;;  %v3403_v28 = vld [vmem:[%s4512_s1 + $0x788] ss:$16 sps:$4 sm:$0xff]  }
  0x8b   :  { %1767 = vmatpush1.bf16.msra.mxu0 %v3240_v38  ;;  %1931 = vmatpush1.bf16.msra.mxu1 %v3243_v39  ;;  %v102_v38 = vcombine.low %v3952_v36, %v3955_v37  ;;  %v3330_v39 = vld [vmem:[%s4512_s1 + $0x604] ss:$16 sps:$4 sm:$0xff]   ;;  %v3331_v36 = vld [vmem:[%s4512_s1 + $0x608] ss:$16 sps:$4 sm:$0xff]  }
  0x8c   :  { %1768 = vmatprep.subr.bf16.mxu0 %v3248_v41  ;;  %1932 = vmatprep.subr.bf16.mxu1 %v3251_v42  ;;  %v105_v41 = vcombine.high %v4125_v33, %v4128_v34  ;;  %v3336_v42 = vld [vmem:[%s4512_s1 + $0x624] ss:$16 sps:$4 sm:$0xff]  }
  0x8d   :  { %v118_v37 = vpack.c.bf16 %v102_v38, %v102_v38  ;;  %v3417_v38 = vld [vmem:[%s4512_s1 + $0x7cc] ss:$16 sps:$4 sm:$0xff]  }
  0x8f   :  { %1769 = vmatpush1.bf16.msra.mxu0 %v3246_v44  ;;  %1933 = vmatpush1.bf16.msra.mxu1 %v3249_v45  ;;  %v3334_v44 = vld [vmem:[%s4512_s1 + $0x620] ss:$16 sps:$4 sm:$0xff]   ;;  %v121_v45 = vpack.c.bf16 %v105_v41, %v105_v41  ;;  %v3423_v41 = vld [vmem:[%s4512_s1 + $0x7ec] ss:$16 sps:$4 sm:$0xff]  }
  0x90   :  { %1770 = vmatprep.subr.bf16.mxu0 %v3254_v47  ;;  %1934 = vmatprep.subr.bf16.mxu1 %v3257_v48  ;;  %v3337_v47 = vld [vmem:[%s4512_s1 + $0x628] ss:$16 sps:$4 sm:$0xff]   ;;  %v3342_v48 = vld [vmem:[%s4512_s1 + $0x644] ss:$16 sps:$4 sm:$0xff]  }
  0x93   :  { %1771 = vmatpush1.bf16.msra.mxu0 %v3252_v49  ;;  %1935 = vmatpush1.bf16.msra.mxu1 %v3255_v50  ;;  %v3345_v49 = vld [vmem:[%s4512_s1 + $0x64c] ss:$16 sps:$4 sm:$0xff]   ;;  %v3340_v50 = vld [vmem:[%s4512_s1 + $0x640] ss:$16 sps:$4 sm:$0xff]  }
  0x94   :  { %1772 = vmatprep.subr.bf16.mxu0 %v3260_v51  ;;  %1936 = vmatprep.subr.bf16.mxu1 %v3263_v52  ;;  %v3343_v51 = vld [vmem:[%s4512_s1 + $0x648] ss:$16 sps:$4 sm:$0xff]   ;;  %v3348_v52 = vld [vmem:[%s4512_s1 + $0x664] ss:$16 sps:$4 sm:$0xff]  }
  0x97   :  { %1773 = vmatpush1.bf16.msra.mxu0 %v3258_v54  ;;  %1937 = vmatpush1.bf16.msra.mxu1 %v3261_v55  ;;  %v3351_v54 = vld [vmem:[%s4512_s1 + $0x66c] ss:$16 sps:$4 sm:$0xff]   ;;  %v3346_v55 = vld [vmem:[%s4512_s1 + $0x660] ss:$16 sps:$4 sm:$0xff]  }
  0x98   :  { %1774 = vmatprep.subr.bf16.mxu0 %v3266_v56  ;;  %1938 = vmatprep.subr.bf16.mxu1 %v3269_v57  ;;  %v3349_v56 = vld [vmem:[%s4512_s1 + $0x668] ss:$16 sps:$4 sm:$0xff]   ;;  %v3354_v57 = vld [vmem:[%s4512_s1 + $0x684] ss:$16 sps:$4 sm:$0xff]  }
  0x9b   :  { %1775 = vmatpush1.bf16.msra.mxu0 %v3264_v58  ;;  %1939 = vmatpush1.bf16.msra.mxu1 %v3267_v59  ;;  %v3357_v58 = vld [vmem:[%s4512_s1 + $0x68c] ss:$16 sps:$4 sm:$0xff]   ;;  %v3352_v59 = vld [vmem:[%s4512_s1 + $0x680] ss:$16 sps:$4 sm:$0xff]  }
  0x9c   :  { %1776 = vmatprep.subr.bf16.mxu0 %v3272_v60  ;;  %1940 = vmatprep.subr.bf16.mxu1 %v3275_v61  ;;  %v3355_v60 = vld [vmem:[%s4512_s1 + $0x688] ss:$16 sps:$4 sm:$0xff]   ;;  %v3360_v61 = vld [vmem:[%s4512_s1 + $0x6a4] ss:$16 sps:$4 sm:$0xff]  }
  0x9f   :  { %1777 = vmatpush1.bf16.msra.mxu0 %v3270_v62  ;;  %1941 = vmatpush1.bf16.msra.mxu1 %v3273_v63  ;;  %v3363_v62 = vld [vmem:[%s4512_s1 + $0x6ac] ss:$16 sps:$4 sm:$0xff]   ;;  %v3358_v63 = vld [vmem:[%s4512_s1 + $0x6a0] ss:$16 sps:$4 sm:$0xff]  }
  0xa0   :  { %1778 = vmatprep.subr.bf16.mxu0 %v3278_v0  ;;  %1942 = vmatprep.subr.bf16.mxu1 %v3281_v1  ;;  %v3361_v0 = vld [vmem:[%s4512_s1 + $0x6a8] ss:$16 sps:$4 sm:$0xff]   ;;  %v3366_v1 = vld [vmem:[%s4512_s1 + $0x6c4] ss:$16 sps:$4 sm:$0xff]  }
  0xa3   :  { %1779 = vmatpush1.bf16.msra.mxu0 %v3276_v2  ;;  %1943 = vmatpush1.bf16.msra.mxu1 %v3279_v3  ;;  %v3369_v2 = vld [vmem:[%s4512_s1 + $0x6cc] ss:$16 sps:$4 sm:$0xff]   ;;  %v3364_v3 = vld [vmem:[%s4512_s1 + $0x6c0] ss:$16 sps:$4 sm:$0xff]  }
  0xa4   :  { %1780 = vmatprep.subr.bf16.mxu0 %v3284_v4  ;;  %1944 = vmatprep.subr.bf16.mxu1 %v3287_v5  ;;  %v3367_v4 = vld [vmem:[%s4512_s1 + $0x6c8] ss:$16 sps:$4 sm:$0xff]   ;;  %v3372_v5 = vld [vmem:[%s4512_s1 + $0x6e4] ss:$16 sps:$4 sm:$0xff]  }
  0xa7   :  { %1781 = vmatpush1.bf16.msra.mxu0 %v3282_v6  ;;  %1945 = vmatpush1.bf16.msra.mxu1 %v3285_v7  ;;  %v3375_v6 = vld [vmem:[%s4512_s1 + $0x6ec] ss:$16 sps:$4 sm:$0xff]   ;;  %v3370_v7 = vld [vmem:[%s4512_s1 + $0x6e0] ss:$16 sps:$4 sm:$0xff]  }
  0xa8   :  { %1782 = vmatprep.subr.bf16.mxu0 %v3290_v8  ;;  %1946 = vmatprep.subr.bf16.mxu1 %v3293_v9  ;;  %v3373_v8 = vld [vmem:[%s4512_s1 + $0x6e8] ss:$16 sps:$4 sm:$0xff]   ;;  %v3378_v9 = vld [vmem:[%s4512_s1 + $0x704] ss:$16 sps:$4 sm:$0xff]  }
  0xab   :  { %1783 = vmatpush1.bf16.msra.mxu0 %v3288_v10  ;;  %1947 = vmatpush1.bf16.msra.mxu1 %v3291_v11  ;;  %v3381_v10 = vld [vmem:[%s4512_s1 + $0x70c] ss:$16 sps:$4 sm:$0xff]   ;;  %v3376_v11 = vld [vmem:[%s4512_s1 + $0x700] ss:$16 sps:$4 sm:$0xff]  }
  0xac   :  { %1784 = vmatprep.subr.bf16.mxu0 %v3296_v14  ;;  %1948 = vmatprep.subr.bf16.mxu1 %v3299_v15  ;;  %v3379_v14 = vld [vmem:[%s4512_s1 + $0x708] ss:$16 sps:$4 sm:$0xff]   ;;  %v3384_v15 = vld [vmem:[%s4512_s1 + $0x724] ss:$16 sps:$4 sm:$0xff]  }
  0xaf   :  { %1785 = vmatpush1.bf16.msra.mxu0 %v3294_v16  ;;  %1949 = vmatpush1.bf16.msra.mxu1 %v3297_v17  ;;  %v3387_v16 = vld [vmem:[%s4512_s1 + $0x72c] ss:$16 sps:$4 sm:$0xff]   ;;  %v3382_v17 = vld [vmem:[%s4512_s1 + $0x720] ss:$16 sps:$4 sm:$0xff]  }
  0xb0   :  { %1786 = vmatprep.subr.bf16.mxu0 %v3302_v18  ;;  %1950 = vmatprep.subr.bf16.mxu1 %v3305_v19  ;;  %v3385_v18 = vld [vmem:[%s4512_s1 + $0x728] ss:$16 sps:$4 sm:$0xff]   ;;  %v3390_v19 = vld [vmem:[%s4512_s1 + $0x744] ss:$16 sps:$4 sm:$0xff]  }
  0xb3   :  { %1787 = vmatpush1.bf16.msra.mxu0 %v3300_v20  ;;  %1951 = vmatpush1.bf16.msra.mxu1 %v3303_v21  ;;  %v3393_v20 = vld [vmem:[%s4512_s1 + $0x74c] ss:$16 sps:$4 sm:$0xff]   ;;  %v3388_v21 = vld [vmem:[%s4512_s1 + $0x740] ss:$16 sps:$4 sm:$0xff]  }
  0xb4   :  { %1788 = vmatprep.subr.bf16.mxu0 %v3308_v22  ;;  %1952 = vmatprep.subr.bf16.mxu1 %v3311_v23  ;;  %v3391_v22 = vld [vmem:[%s4512_s1 + $0x748] ss:$16 sps:$4 sm:$0xff]   ;;  %v3396_v23 = vld [vmem:[%s4512_s1 + $0x764] ss:$16 sps:$4 sm:$0xff]  }
  0xb7   :  { %1789 = vmatpush1.bf16.msra.mxu0 %v3306_v24  ;;  %1953 = vmatpush1.bf16.msra.mxu1 %v3309_v25  ;;  %v3399_v24 = vld [vmem:[%s4512_s1 + $0x76c] ss:$16 sps:$4 sm:$0xff]   ;;  %v3394_v25 = vld [vmem:[%s4512_s1 + $0x760] ss:$16 sps:$4 sm:$0xff]  }
  0xb8   :  { %1790 = vmatprep.subr.bf16.mxu0 %v3314_v26  ;;  %1954 = vmatprep.subr.bf16.mxu1 %v3317_v27  ;;  %v3397_v26 = vld [vmem:[%s4512_s1 + $0x768] ss:$16 sps:$4 sm:$0xff]   ;;  %v3402_v27 = vld [vmem:[%s4512_s1 + $0x784] ss:$16 sps:$4 sm:$0xff]  }
  0xbb   :  { %1791 = vmatpush1.bf16.msra.mxu0 %v3312_v13  ;;  %1955 = vmatpush1.bf16.msra.mxu1 %v3315_v29  ;;  %v3400_v13 = vld [vmem:[%s4512_s1 + $0x780] ss:$16 sps:$4 sm:$0xff]   ;;  %v3408_v29 = vld [vmem:[%s4512_s1 + $0x7a4] ss:$16 sps:$4 sm:$0xff]  }
  0xbc   :  { %1792 = vmatprep.subr.bf16.mxu0 %v3320_v30  ;;  %1956 = vmatprep.subr.bf16.mxu1 %v3323_v31  ;;  %v3411_v30 = vld [vmem:[%s4512_s1 + $0x7ac] ss:$16 sps:$4 sm:$0xff]   ;;  %v3406_v31 = vld [vmem:[%s4512_s1 + $0x7a0] ss:$16 sps:$4 sm:$0xff]  }
  0xbf   :  { %1793 = vmatpush1.bf16.msra.mxu0 %v3318_v32  ;;  %1957 = vmatpush1.bf16.msra.mxu1 %v3321_v35  ;;  %v3409_v32 = vld [vmem:[%s4512_s1 + $0x7a8] ss:$16 sps:$4 sm:$0xff]   ;;  %v3414_v35 = vld [vmem:[%s4512_s1 + $0x7c4] ss:$16 sps:$4 sm:$0xff]  }
  0xc0   :  { %1803 = vmatprep.subr.bf16.mxu0 %v3330_v39  ;;  %1967 = vmatprep.subr.bf16.mxu1 %v3333_v53  ;;  %v3412_v39 = vld [vmem:[%s4512_s1 + $0x7c0] ss:$16 sps:$4 sm:$0xff]   ;;  %v3415_v53 = vld [vmem:[%s4512_s1 + $0x7c8] ss:$16 sps:$4 sm:$0xff]  }
  0xc2   :  { %1795 = vmatmul.mubr.bf16.vlgmr.msra.gmra.mrb[0].mxu0 %v118_v37  ;;  %1959 = vmatmul.mubr.bf16.vlgmr.msra.gmra.mrb[0].mxu1 %v118_v37  ;;  %v3418_v37 = vld [vmem:[%s4512_s1 + $0x7e0] ss:$16 sps:$4 sm:$0xff]  }
  0xc3   :  { %1804 = vmatpush1.bf16.msra.mxu0 %v3328_v40  ;;  %1968 = vmatpush1.bf16.msra.mxu1 %v3331_v36  ;;  %v3420_v40 = vld [vmem:[%s4512_s1 + $0x7e4] ss:$16 sps:$4 sm:$0xff]   ;;  %v104_v36 = vcombine.low %v4125_v33, %v4128_v34 }
  0xc4   :  { %1805 = vmatprep.subr.bf16.mxu0 %v3336_v42  ;;  %1969 = vmatprep.subr.bf16.mxu1 %v3339_v43  ;;  %v3421_v42 = vld [vmem:[%s4512_s1 + $0x7e8] ss:$16 sps:$4 sm:$0xff]   ;;  %v3426_v43 = vld [vmem:[%s4514_s2 + $0x40] sm:$0xff]  }
  0xc5   :  { %1835 = vmatprep.mubr.bf16.mxu0 %v121_v45  ;;  %1999 = vmatprep.mubr.bf16.mxu1 %v121_v45  ;;  %v3427_v33 = vld [vmem:[%s4514_s2 + $0xc0] sm:$0xff]   ;;  %v120_v34 = vpack.c.bf16 %v104_v36, %v104_v36 }
  0xc6   :  { %v3429_v45 = vld [vmem:[%s4514_s2 + $0x80] sm:$0xff]  }
  0xc7   :  { %1806 = vmatpush1.bf16.msra.mxu0 %v3334_v44  ;;  %1970 = vmatpush1.bf16.msra.mxu1 %v3337_v47  ;;  %v3428_v44 = vld [vmem:[%s4514_s2] sm:$0xff]   ;;  %v3430_v47 = vld [vmem:[%s4514_s2 + $0x48] sm:$0xff]  }
  0xc8   :  { %1807 = vmatprep.subr.bf16.mxu0 %v3342_v48  ;;  %1971 = vmatprep.subr.bf16.mxu1 %v3345_v49  ;;  %v3431_v48 = vld [vmem:[%s4514_s2 + $0xc8] sm:$0xff]   ;;  %v3458_v36 = vld [vmem:[%s4514_s2 + $0x100] sm:$0xff]  }
  0xc9   :  { %v3432_v49 = vld [vmem:[%s4514_s2 + $0x8] sm:$0xff]  }
  0xcb   :  { %1808 = vmatpush1.bf16.msra.mxu0 %v3340_v50  ;;  %1972 = vmatpush1.bf16.msra.mxu1 %v3343_v51  ;;  %v3433_v50 = vld [vmem:[%s4514_s2 + $0x88] sm:$0xff]   ;;  %v3434_v51 = vld [vmem:[%s4514_s2 + $0x50] sm:$0xff]  }
  0xcc   :  { %1809 = vmatprep.subr.bf16.mxu0 %v3348_v52  ;;  %1973 = vmatprep.subr.bf16.mxu1 %v3351_v54  ;;  %v3435_v52 = vld [vmem:[%s4514_s2 + $0xd0] sm:$0xff]  }
  0xcd   :  { %v3436_v54 = vld [vmem:[%s4514_s2 + $0x10] sm:$0xff]  }
  0xcf   :  { %1810 = vmatpush1.bf16.msra.mxu0 %v3346_v55  ;;  %1974 = vmatpush1.bf16.msra.mxu1 %v3349_v56  ;;  %v3437_v55 = vld [vmem:[%s4514_s2 + $0x90] sm:$0xff]   ;;  %v3438_v56 = vld [vmem:[%s4514_s2 + $0x58] sm:$0xff]  }
  0xd0   :  { %1811 = vmatprep.subr.bf16.mxu0 %v3354_v57  ;;  %1975 = vmatprep.subr.bf16.mxu1 %v3357_v58  ;;  %v3439_v57 = vld [vmem:[%s4514_s2 + $0xd8] sm:$0xff]  }
  0xd1   :  { %v3440_v58 = vld [vmem:[%s4514_s2 + $0x18] sm:$0xff]  }
  0xd3   :  { %1812 = vmatpush1.bf16.msra.mxu0 %v3352_v59  ;;  %1976 = vmatpush1.bf16.msra.mxu1 %v3355_v60  ;;  %v3441_v59 = vld [vmem:[%s4514_s2 + $0x98] sm:$0xff]   ;;  %v3442_v60 = vld [vmem:[%s4514_s2 + $0x60] sm:$0xff]  }
  0xd4   :  { %1813 = vmatprep.subr.bf16.mxu0 %v3360_v61  ;;  %1977 = vmatprep.subr.bf16.mxu1 %v3363_v62  ;;  %v3443_v61 = vld [vmem:[%s4514_s2 + $0xe0] sm:$0xff]  }
  0xd5   :  { %v3444_v62 = vld [vmem:[%s4514_s2 + $0x20] sm:$0xff]  }
  0xd7   :  { %1814 = vmatpush1.bf16.msra.mxu0 %v3358_v63  ;;  %1978 = vmatpush1.bf16.msra.mxu1 %v3361_v0  ;;  %v3445_v63 = vld [vmem:[%s4514_s2 + $0xa0] sm:$0xff]   ;;  %v3446_v0 = vld [vmem:[%s4514_s2 + $0x68] sm:$0xff]  }
  0xd8   :  { %1815 = vmatprep.subr.bf16.mxu0 %v3366_v1  ;;  %1979 = vmatprep.subr.bf16.mxu1 %v3369_v2  ;;  %v3447_v1 = vld [vmem:[%s4514_s2 + $0xe8] sm:$0xff]  }
  0xd9   :  { %v3448_v2 = vld [vmem:[%s4514_s2 + $0x28] sm:$0xff]  }
  0xdb   :  { %1816 = vmatpush1.bf16.msra.mxu0 %v3364_v3  ;;  %1980 = vmatpush1.bf16.msra.mxu1 %v3367_v4  ;;  %v3449_v3 = vld [vmem:[%s4514_s2 + $0xa8] sm:$0xff]   ;;  %v3450_v4 = vld [vmem:[%s4514_s2 + $0x70] sm:$0xff]  }
  0xdc   :  { %1817 = vmatprep.subr.bf16.mxu0 %v3372_v5  ;;  %1981 = vmatprep.subr.bf16.mxu1 %v3375_v6  ;;  %v3451_v5 = vld [vmem:[%s4514_s2 + $0xf0] sm:$0xff]  }
  0xdd   :  { %v3452_v6 = vld [vmem:[%s4514_s2 + $0x30] sm:$0xff]  }
  0xdf   :  { %1818 = vmatpush1.bf16.msra.mxu0 %v3370_v7  ;;  %1982 = vmatpush1.bf16.msra.mxu1 %v3373_v8  ;;  %v3453_v7 = vld [vmem:[%s4514_s2 + $0xb0] sm:$0xff]   ;;  %v3454_v8 = vld [vmem:[%s4514_s2 + $0x78] sm:$0xff]  }
  0xe0   :  { %1819 = vmatprep.subr.bf16.mxu0 %v3378_v9  ;;  %1983 = vmatprep.subr.bf16.mxu1 %v3381_v10  ;;  %v3455_v9 = vld [vmem:[%s4514_s2 + $0xf8] sm:$0xff]  }
  0xe1   :  { %v3456_v10 = vld [vmem:[%s4514_s2 + $0x38] sm:$0xff]  }
  0xe3   :  { %1820 = vmatpush1.bf16.msra.mxu0 %v3376_v11  ;;  %1984 = vmatpush1.bf16.msra.mxu1 %v3379_v14  ;;  %v3457_v11 = vld [vmem:[%s4514_s2 + $0xb8] sm:$0xff]   ;;  %v3475_v14 = vmov 0.0  }
  0xe4   :  { %1821 = vmatprep.subr.bf16.mxu0 %v3384_v15  ;;  %1985 = vmatprep.subr.bf16.mxu1 %v3387_v16  ;;  %v382_v15 = vsub.s32 0, %v3628_v46  ;;  %v390_v16 = vsub.s32 2, %v3628_v46 }
  0xe7   :  { %1822 = vmatpush1.bf16.msra.mxu0 %v3382_v17  ;;  %1986 = vmatpush1.bf16.msra.mxu1 %v3385_v18  ;;  %v378_v17 = vld [vmem:[%s4515_s3] sm:$0xf]  ;;  %v386_v18 = vsub.s32 1, %v3628_v46 }
  0xe8   :  { %1823 = vmatprep.subr.bf16.mxu0 %v3390_v19  ;;  %1987 = vmatprep.subr.bf16.mxu1 %v3393_v20  ;;  %v394_v19 = vsub.s32 3, %v3628_v46  ;;  %v383_v20 = vrot.slane %v378_v17, %v382_v15 }
  0xeb   :  { %1824 = vmatpush1.bf16.msra.mxu0 %v3388_v21  ;;  %1988 = vmatpush1.bf16.msra.mxu1 %v3391_v22  ;;  %v391_v21 = vrot.slane %v378_v17, %v390_v16  ;;  %v387_v22 = vrot.slane %v378_v17, %v386_v18 }
  0xec   :  { %1825 = vmatprep.subr.bf16.mxu0 %v3396_v23  ;;  %1989 = vmatprep.subr.bf16.mxu1 %v3399_v24  ;;  %v395_v23 = vrot.slane %v378_v17, %v394_v19 }
  0xef   :  { %1826 = vmatpush1.bf16.msra.mxu0 %v3394_v25  ;;  %1990 = vmatpush1.bf16.msra.mxu1 %v3397_v26 }
  0xf0   :  { %1827 = vmatprep.subr.bf16.mxu0 %v3402_v27  ;;  %1991 = vmatprep.subr.bf16.mxu1 %v3405_v12 }
  0xf3   :  { %1828 = vmatpush1.bf16.msra.mxu0 %v3400_v13  ;;  %1992 = vmatpush1.bf16.msra.mxu1 %v3403_v28 }
  0xf4   :  { %1829 = vmatprep.subr.bf16.mxu0 %v3408_v29  ;;  %1993 = vmatprep.subr.bf16.mxu1 %v3411_v30 }
  0xf7   :  { %1830 = vmatpush1.bf16.msra.mxu0 %v3406_v31  ;;  %1994 = vmatpush1.bf16.msra.mxu1 %v3409_v32 }
  0xf8   :  { %1831 = vmatprep.subr.bf16.mxu0 %v3414_v35  ;;  %1995 = vmatprep.subr.bf16.mxu1 %v3417_v38 }
  0xfb   :  { %1832 = vmatpush1.bf16.msra.mxu0 %v3412_v39  ;;  %1996 = vmatpush1.bf16.msra.mxu1 %v3415_v53 }
  0xfc   :  { %1833 = vmatprep.subr.bf16.mxu0 %v3420_v40  ;;  %1997 = vmatprep.subr.bf16.mxu1 %v3423_v41 }
  0xff   :  { %1834 = vmatpush1.bf16.msra.mxu0 %v3418_v37  ;;  %1998 = vmatpush1.bf16.msra.mxu1 %v3421_v42 }
 0x100   :  { %2897 = vmatprep.subr.bf16.mxu0 %v3426_v43  ;;  %2919 = vmatprep.subr.bf16.mxu1 %v3427_v33  ;;  %v3459_v43 = vld [vmem:[%s4514_s2 + $0x108] sm:$0xff]   ;;  %v3460_v33 = vld [vmem:[%s4514_s2 + $0x110] sm:$0xff]  }
 0x102   :  { %1836 = vmatmul.mubr.bf16.vlgmr.msra.gmra.mrb[0].mxu0 %v120_v34  ;;  %2000 = vmatmul.mubr.bf16.vlgmr.msra.gmra.mrb[0].mxu1 %v120_v34  ;;  %v3461_v34 = vld [vmem:[%s4514_s2 + $0x118] sm:$0xff]  }
 0x103   :  { %2898 = vmatpush3.bf16.msra.mxu0 %v3428_v44  ;;  %2920 = vmatpush3.bf16.msra.mxu1 %v3429_v45  ;;  %v3462_v44 = vld [vmem:[%s4514_s2 + $0x120] sm:$0xff]   ;;  %v3463_v45 = vld [vmem:[%s4514_s2 + $0x128] sm:$0xff]  }
 0x104   :  { %2899 = vmatprep.subr.bf16.mxu0 %v3430_v47  ;;  %2921 = vmatprep.subr.bf16.mxu1 %v3431_v48  ;;  %v3464_v47 = vld [vmem:[%s4514_s2 + $0x130] sm:$0xff]   ;;  %v3465_v48 = vld [vmem:[%s4514_s2 + $0x138] sm:$0xff]  }
 0x107   :  { %2900 = vmatpush3.bf16.msra.mxu0 %v3432_v49  ;;  %2922 = vmatpush3.bf16.msra.mxu1 %v3433_v50  ;;  %v3466_v49 = vld [vmem:[%s4514_s2 + $0x140] sm:$0xff]   ;;  %v3467_v50 = vld [vmem:[%s4514_s2 + $0x148] sm:$0xff]  }
 0x108   :  { %2901 = vmatprep.subr.bf16.mxu0 %v3434_v51  ;;  %2923 = vmatprep.subr.bf16.mxu1 %v3435_v52  ;;  %v3468_v51 = vld [vmem:[%s4514_s2 + $0x150] sm:$0xff]   ;;  %v3469_v52 = vld [vmem:[%s4514_s2 + $0x158] sm:$0xff]  }
 0x10b   :  { %2902 = vmatpush3.bf16.msra.mxu0 %v3436_v54  ;;  %2924 = vmatpush3.bf16.msra.mxu1 %v3437_v55  ;;  %v3470_v54 = vld [vmem:[%s4514_s2 + $0x160] sm:$0xff]   ;;  %v3471_v55 = vld [vmem:[%s4514_s2 + $0x168] sm:$0xff]  }
 0x10c   :  { %2903 = vmatprep.subr.bf16.mxu0 %v3438_v56  ;;  %2925 = vmatprep.subr.bf16.mxu1 %v3439_v57 }
 0x10f   :  { %2904 = vmatpush3.bf16.msra.mxu0 %v3440_v58  ;;  %2926 = vmatpush3.bf16.msra.mxu1 %v3441_v59  ;;  %v2846_v58 = vld [vmem:[%s4515_s3 + $0x4] ss:$0 sm:$0xff] }
 0x110   :  { %2905 = vmatprep.subr.bf16.mxu0 %v3442_v60  ;;  %2927 = vmatprep.subr.bf16.mxu1 %v3443_v61 }
 0x113   :  { %2906 = vmatpush3.bf16.msra.mxu0 %v3444_v62  ;;  %2928 = vmatpush3.bf16.msra.mxu1 %v3445_v63 }
 0x114   :  { %2907 = vmatprep.subr.bf16.mxu0 %v3446_v0  ;;  %2929 = vmatprep.subr.bf16.mxu1 %v3447_v1 }
 0x117   :  { %2908 = vmatpush3.bf16.msra.mxu0 %v3448_v2  ;;  %2930 = vmatpush3.bf16.msra.mxu1 %v3449_v3 }
 0x118   :  { %2909 = vmatprep.subr.bf16.mxu0 %v3450_v4  ;;  %2931 = vmatprep.subr.bf16.mxu1 %v3451_v5 }
 0x11b   :  { %2910 = vmatpush3.bf16.msra.mxu0 %v3452_v6  ;;  %2932 = vmatpush3.bf16.msra.mxu1 %v3453_v7  ;;  %v3472_v7 = vld [vmem:[%s4514_s2 + $0x170] sm:$0xff]  }
 0x11c   :  { %2911 = vmatprep.subr.bf16.mxu0 %v3454_v8  ;;  %2933 = vmatprep.subr.bf16.mxu1 %v3455_v9  ;;  %v3473_v8 = vld [vmem:[%s4514_s2 + $0x178] sm:$0xff]   ;;  %v2879_v9 = vld [vmem:[%s4515_s3 + $0x5] ss:$0 sm:$0xff] }
 0x11f   :  { %2912 = vmatpush3.bf16.msra.mxu0 %v3456_v10  ;;  %2934 = vmatpush3.bf16.msra.mxu1 %v3457_v11 }
 0x120   :  { %2959 = vmatprep.subr.bf16.mxu0 %v3475_v14  ;;  %2979 = vmatprep.subr.bf16.mxu1 %v3475_v14 }
 0x1d5   :  { %v1837_v24 = vpop.f32.mrb[0].mxu0  ;;  %v2001_v25 = vpop.f32.mrb[0].mxu1 }
 0x1d6   :  { %v2999_v26 = vadd.f32 %v1837_v24, %v383_v20  ;;  %v3001_v27 = vadd.f32 %v2001_v25, %v391_v21  ;;  %v1839_v12 = vpop.f32.mrb[1].mxu0  ;;  %v2003_v13 = vpop.f32.mrb[1].mxu1 }
 0x1d7   :  { %v3000_v28 = vadd.f32 %v1839_v12, %v387_v22  ;;  %v3002_v29 = vadd.f32 %v2003_v13, %v395_v23  ;;  %v1841_v30 = vpop.f32.mrb[2].mxu0  ;;  %v2005_v31 = vpop.f32.mrb[2].mxu1 }
 0x1d8   :  { %v2008_v32 = vmax.f32 %v2999_v26, 0.0  ;;  %v2010_v35 = vmax.f32 %v3001_v27, 0.0  ;;  %v1842_v38 = vpop.f32.mrb[3].mxu0  ;;  %v2006_v39 = vpop.f32.mrb[3].mxu1 }
 0x1d9   :  { %v2009_v53 = vmax.f32 %v3000_v28, 0.0  ;;  %v2011_v46 = vmax.f32 %v3002_v29, 0.0 }
 0x1da   :  { %v2012_v37 = vpack.c.bf16 %v2008_v32, %v2008_v32  ;;  %v2014_v42 = vpack.c.bf16 %v2010_v35, %v2010_v35 }
 0x1db   :  { %v2013_v40 = vpack.c.bf16 %v2009_v53, %v2009_v53  ;;  %v2015_v41 = vpack.c.bf16 %v2011_v46, %v2011_v46 }
 0x1dd   :  { %2311 = vmatprep.mubr.bf16.mxu0 %v2013_v40  ;;  %2351 = vmatprep.mubr.bf16.mxu1 %v2015_v41 }
 0x1de   :  { %2312 = vmatmul.mubr.bf16.vlgmr.msra.gmra.mrb[4].mxu0 %v2012_v37  ;;  %2352 = vmatmul.mubr.bf16.vlgmr.msra.gmra.mrb[4].mxu1 %v2014_v42 }
 0x1df   :  { %2960 = vmatpush3.bf16.msra.mxu0 %v3458_v36  ;;  %2975 = vmatprep.mubr.msk.bf16.mxu0 %vm3476_vm0, %v3475_v14 }
 0x1e0   :  { %2961 = vmatprep.subr.bf16.mxu0 %v3475_v14  ;;  %2995 = vmatprep.mubr.msk.bf16.mxu1 %vm3476_vm0, %v3475_v14 }
 0x1e1   :  { %2980 = vmatpush3.bf16.msra.mxu1 %v3466_v49 }
 0x1e2   :  { %2981 = vmatprep.subr.bf16.mxu1 %v3475_v14 }
 0x1e3   :  { %2962 = vmatpush3.bf16.msra.mxu0 %v3459_v43 }
 0x1e4   :  { %2963 = vmatprep.subr.bf16.mxu0 %v3475_v14 }
 0x1e5   :  { %2982 = vmatpush3.bf16.msra.mxu1 %v3467_v50 }
 0x1e6   :  { %2983 = vmatprep.subr.bf16.mxu1 %v3475_v14 }
 0x1e7   :  { %2964 = vmatpush3.bf16.msra.mxu0 %v3460_v33 }
 0x1e8   :  { %2965 = vmatprep.subr.bf16.mxu0 %v3475_v14 }
 0x1e9   :  { %2984 = vmatpush3.bf16.msra.mxu1 %v3468_v51 }
 0x1ea   :  { %2985 = vmatprep.subr.bf16.mxu1 %v3475_v14 }
 0x1eb   :  { %2966 = vmatpush3.bf16.msra.mxu0 %v3461_v34 }
 0x1ec   :  { %2967 = vmatprep.subr.bf16.mxu0 %v3475_v14 }
 0x1ed   :  { %2986 = vmatpush3.bf16.msra.mxu1 %v3469_v52 }
 0x1ee   :  { %2987 = vmatprep.subr.bf16.mxu1 %v3475_v14 }
 0x1ef   :  { %2968 = vmatpush3.bf16.msra.mxu0 %v3462_v44 }
 0x1f0   :  { %2969 = vmatprep.subr.bf16.mxu0 %v3475_v14 }
 0x1f1   :  { %2988 = vmatpush3.bf16.msra.mxu1 %v3470_v54 }
 0x1f2   :  { %2989 = vmatprep.subr.bf16.mxu1 %v3475_v14 }
 0x1f3   :  { %2970 = vmatpush3.bf16.msra.mxu0 %v3463_v45 }
 0x1f4   :  { %2971 = vmatprep.subr.bf16.mxu0 %v3475_v14 }
 0x1f5   :  { %2990 = vmatpush3.bf16.msra.mxu1 %v3471_v55 }
 0x1f6   :  { %2991 = vmatprep.subr.bf16.mxu1 %v3475_v14 }
 0x1f7   :  { %2972 = vmatpush3.bf16.msra.mxu0 %v3464_v47 }
 0x1f8   :  { %2973 = vmatprep.subr.bf16.mxu0 %v3475_v14 }
 0x1f9   :  { %2992 = vmatpush3.bf16.msra.mxu1 %v3472_v7 }
 0x1fa   :  { %2993 = vmatprep.subr.bf16.mxu1 %v3475_v14  ;;  %v2888_v14 = vld [vmem:[%s4515_s3 + $0x6] ss:$0 sm:$0xff] }
 0x1fb   :  { %2974 = vmatpush3.bf16.msra.mxu0 %v3465_v48 }
 0x1fd   :  { %2994 = vmatpush3.bf16.msra.mxu1 %v3473_v8 }
 0x2b1   :  { %v2913_v56 = vpop.f32.mrb[4].mxu0  ;;  %v2935_v57 = vpop.f32.mrb[4].mxu1 }
 0x2b2   :  { %v2914_v59 = vpop.f32.mrb[5].mxu0  ;;  %v2936_v60 = vpop.f32.mrb[5].mxu1 }
 0x2b3   :  { %v2915_v61 = vadd.f32 %v2914_v59, %v2913_v56  ;;  %v2937_v62 = vadd.f32 %v2936_v60, %v2935_v57  ;;  %v2916_v63 = vpop.f32.mrb[6].mxu0  ;;  %v2938_v0 = vpop.f32.mrb[6].mxu1 }
 0x2b4   :  { %v2917_v1 = vpop.f32.mrb[7].mxu0  ;;  %v2939_v2 = vpop.f32.mrb[7].mxu1 }
 0x2b5   :  { %v2314_v3 = vadd.f32 %v2915_v61, %v2846_v58 }
 0x2b7   :  { %v2354_v4 = vadd.f32 %v2937_v62, %v2314_v3 }
 0x2b9   :  { %v2359_v5 = vmax.f32 %v2354_v4, 0.0 }
 0x2bb   :  { %v2360_v6 = vpack.c.bf16 %v2359_v5, %v2359_v5 }
 0x2bd   :  { %2976 = vmatmul.mubr.bf16.vlgmr.msra.gmra.mrb[8].mxu0 %v2360_v6 }
 0x390   :  { %v2466_v10 = vpop.f32.mrb[8].mxu0 }
 0x391   :  { %v2467_v11 = vadd.f32 %v2879_v9, %v2466_v10  ;;  %v2977_v15 = vpop.f32.mrb[9].mxu0 }
 0x392   :  { %v2469_v16 = vpop.f32.mrb[10].mxu0 }
 0x393   :  { %v2472_v17 = vmax.f32 %v2467_v11, 0.0  ;;  %v2978_v18 = vpop.f32.mrb[11].mxu0 }
 0x395   :  { %v2473_v19 = vpack.c.bf16 %v2472_v17, %v2472_v17 }
 0x397   :  { %2996 = vmatmul.mubr.bf16.vlgmr.msra.gmra.mrb[8].mxu1 %v2473_v19 }
 0x46a   :  { %v2579_v20 = vpop.f32.mrb[8].mxu1 }
 0x46b   :  { %v2580_v21 = vadd.f32 %v2888_v14, %v2579_v20  ;;  %v2997_v22 = vpop.f32.mrb[9].mxu1 }
 0x46c   :  { %v2582_v23 = vpop.f32.mrb[10].mxu1 }
 0x46d   :  { %2585 = vst [vmem:[%s4516_s4] sm:$0xff] %v2580_v21  ;;  %v2998_v24 = vpop.f32.mrb[11].mxu1 }

</bundles_post_ra>
